<compile_context>
chip_gen: v7x
topology: tpu7x:2x2x1
jax: 0.10.0
libtpu: 0.0.40
codegen_flags: <defaults>
</compile_context>

<pallas_src>
import functools

import jax
import jax.numpy as jnp
from jax.experimental import pallas as pl
from jax.experimental.pallas import tpu as pltpu

LANE = 128


def _round_up(n, m):
    return (n + m - 1) // m * m


def _has_bf16_vpu():
    """v6e / v7x have a bf16 EUP + VPU path; v5e and older do not."""
    try:
        kind = jax.devices()[0].device_kind.lower()
    except Exception:
        return False
    return not any(tag in kind for tag in ("v2", "v3", "v4", "v5"))


# ----------------------------------------------------------------------------
# Pallas kernel: full encoder + decoder MLP chain for one batch tile.
# ----------------------------------------------------------------------------
def _aesn_kernel(x_ref,
                 w1_ref, b1_ref, w2_ref, b2_ref, w3_ref, b3_ref,   # encoder
                 w4_ref, b4_ref, w5_ref, b5_ref, w6_ref, b6_ref,   # decoder
                 packed_ref, *, act_dtype):
    f32 = jnp.float32
    bf16 = jnp.bfloat16

    def dense(h_bf16, w_ref, b_ref):
        # bf16 x bf16 on the MXU, accumulate in f32, bias add in f32 (VPU).
        return (jnp.dot(h_bf16, w_ref[...], preferred_element_type=f32)
                + b_ref[...])

    def act(a_f32):
        # tanh in bf16 on v6e/v7x (bf16 EUP), f32 on v5e; result bf16 either way.
        return jnp.tanh(a_f32.astype(act_dtype)).astype(bf16)

    # ---- encoder ----
    h = x_ref[...].astype(bf16)                    # (tile_b, num_inputs)
    h = act(dense(h, w1_ref, b1_ref))
    h = act(dense(h, w2_ref, b2_ref))
    code = dense(h, w3_ref, b3_ref)                # (tile_b, P) f32; lanes >= E are 0

    # ---- decoder ----
    h = code.astype(bf16)
    h = act(dense(h, w4_ref, b4_ref))
    h = act(dense(h, w5_ref, b5_ref))
    out = dense(h, w6_ref, b6_ref)                 # real columns live in lanes [E, E+O)

    # code occupies lanes [0, E), out occupies lanes [E, E+O) -> pure add packs
    # both results into one lane-dense store (single bf16 tile writeback).
    packed_ref[...] = (code + out).astype(packed_ref.dtype)


# ----------------------------------------------------------------------------
# Wrapper: batch tiling, packed-output slicing.
# ----------------------------------------------------------------------------
def _choose_tile_b(batch, tile_req, max_tile=1024):
    """Multiple of 16, <= max_tile, and small enough for >= 2 grid steps."""
    tile_req = max(16, (min(int(tile_req), max_tile) // 16) * 16)
    b16 = _round_up(batch, 16)
    if b16 < 32:
        return 16
    # Keep at least two batch tiles so the "parallel" grid axis can shard
    # across both TensorCores on v7x (harmless on single-TC v5e/v6e).
    half = _round_up((b16 + 1) // 2, 16)
    return min(tile_req, half)


def aesn_discriminator_forward(x, padded_params, *, num_inputs, encode_size,
                               tile_b=512):
    """x: (B, num_inputs) f32.
    padded_params: 12 arrays (w, b alternating), weights spectrally normalized,
    transposed to (in, out), padded/shifted by pad_params_for_kernel, bf16;
    biases (1, out_pad) f32."""
    B, F = x.shape
    assert F == num_inputs
    P = padded_params[-1].shape[1]     # packed output width (>= encode+inputs)

    tile_b = _choose_tile_b(B, tile_b)
    Bp = _round_up(B, tile_b)
    xp = x if Bp == B else jnp.pad(x, ((0, Bp - B), (0, 0)))   # batch pad only

    act_dtype = jnp.bfloat16 if _has_bf16_vpu() else jnp.float32
    kernel = functools.partial(_aesn_kernel, act_dtype=act_dtype)

    x_spec = pl.BlockSpec((tile_b, num_inputs), lambda i: (i, 0))
    # Constant index_map -> weights/biases are copied into VMEM once and kept
    # resident across all batch tiles (no re-fetch of an unchanged block index).
    param_specs = [pl.BlockSpec(p.shape, lambda i: (0, 0)) for p in padded_params]
    packed_spec = pl.BlockSpec((tile_b, P), lambda i: (i, 0))

    grid_spec = pltpu.PrefetchScalarGridSpec(
        num_scalar_prefetch=0,
        grid=(Bp // tile_b,),
        in_specs=[x_spec] + param_specs,
        out_specs=packed_spec,
    )

    packed = pl.pallas_call(
        kernel,
        out_shape=jax.ShapeDtypeStruct((Bp, P), jnp.bfloat16),
        grid_spec=grid_spec,
        compiler_params=pltpu.CompilerParams(
            dimension_semantics=("parallel",)),   # batch tiles shard over TCs
    )(xp, *padded_params)

    code = packed[:B, :encode_size].astype(jnp.float32)
    out = packed[:B, encode_size:encode_size + num_inputs].astype(jnp.float32)
    return code, out


# ----------------------------------------------------------------------------
# Deterministic parameter setup (plain JAX glue)
# ----------------------------------------------------------------------------
def _linear_init(key, fan_in, fan_out):
    """PyTorch nn.Linear-style uniform init: W (out, in), b (out,)."""
    kw, kb = jax.random.split(key)
    bound = 1.0 / jnp.sqrt(fan_in)
    w = jax.random.uniform(kw, (fan_out, fan_in), jnp.float32, -bound, bound)
    b = jax.random.uniform(kb, (fan_out,), jnp.float32, -bound, bound)
    return w, b


def _spectral_normalize(w, key, n_iter=5):
    """Power-iteration spectral norm, applied to the (out, in) weight."""
    u = jax.random.normal(key, (w.shape[0],), jnp.float32)
    u = u / (jnp.linalg.norm(u) + 1e-12)
    for _ in range(n_iter):
        v = w.T @ u
        v = v / (jnp.linalg.norm(v) + 1e-12)
        u = w @ v
        u = u / (jnp.linalg.norm(u) + 1e-12)
    sigma = u @ (w @ v)
    return w / sigma


def make_params(key, num_inputs, hidden_size=(128, 128), encode_size=64):
    """Unpadded f32 params: weights (in, out), biases (1, out)."""
    dims = []
    last = num_inputs
    for nh in hidden_size:               # encoder hidden layers
        dims.append((last, nh)); last = nh
    dims.append((last, encode_size))     # encoder out
    last = encode_size
    for nh in hidden_size:               # decoder hidden layers
        dims.append((last, nh)); last = nh
    dims.append((last, num_inputs))      # decoder out (logic)

    params = []
    for (fan_in, fan_out) in dims:
        key, k1, k2 = jax.random.split(key, 3)
        w, b = _linear_init(k1, fan_in, fan_out)
        w = _spectral_normalize(w, k2)                 # SpectralNorm wrapper
        params.append(jnp.asarray(w.T))                # (in, out) f32
        params.append(jnp.asarray(b.reshape(1, -1)))   # (1, out)  f32
    return params


def pad_params_for_kernel(params, num_inputs, encode_size, lane=LANE):
    """Pad/place weights for the fused kernel.

    * Weights -> bf16, biases -> f32 (1, out_pad).
    * Layer 0 keeps its true in-dim (x is passed at true width, no lane pad).
    * Encoder-out and decoder-out are padded to the packed width
      P = round_up(encode_size + num_inputs, 128); the decoder-out columns are
      shifted to lanes [encode_size, encode_size+num_inputs) so the kernel can
      emit a single lane-dense packed output via a plain add.
    * Decoder-in (layer after the code) gets its rows padded to P with zeros.
    """
    n_layers = len(params) // 2
    n_hidden = (n_layers - 2) // 2
    idx_enc_out = n_hidden
    idx_dec_in = n_hidden + 1
    idx_dec_out = n_layers - 1
    P = _round_up(encode_size + num_inputs, lane)

    padded = []
    for li in range(n_layers):
        w, b = params[2 * li], params[2 * li + 1]
        fin, fout = w.shape
        if li == 0:
            fin_p = fin                       # x arrives at true width
        elif li == idx_dec_in:
            fin_p = P                         # consumes the packed-width code
        else:
            fin_p = _round_up(fin, lane)
        if li in (idx_enc_out, idx_dec_out):
            fout_p = P
        else:
            fout_p = _round_up(fout, lane)
        shift = encode_size if li == idx_dec_out else 0

        wp = jnp.zeros((fin_p, fout_p), jnp.float32).at[:fin, shift:shift + fout].set(w)
        bp = jnp.zeros((1, fout_p), jnp.float32).at[:, shift:shift + fout].set(b[0])
        padded.append(wp.astype(jnp.bfloat16))
        padded.append(bp.astype(jnp.float32))
    return padded


# ----------------------------------------------------------------------------
# Pure-JAX f32 reference for sanity check
# ----------------------------------------------------------------------------
def _ref_forward(x, params):
    (w1, b1, w2, b2, w3, b3, w4, b4, w5, b5, w6, b6) = params
    h = jnp.tanh(x @ w1 + b1)
    h = jnp.tanh(h @ w2 + b2)
    code = h @ w3 + b3
    h = jnp.tanh(code @ w4 + b4)
    h = jnp.tanh(h @ w5 + b5)
    out = h @ w6 + b6
    return code, out


if __name__ == "__main__":
    num_inputs = 32
    hidden_size = (128, 128)
    encode_size = 64
    batch = 1024         # -> tile_b clamps to 512, grid of 2 (both v7x TCs busy)

    key = jax.random.PRNGKey(0)
    kx, kp = jax.random.split(key)
    x = jax.random.normal(kx, (batch, num_inputs), jnp.float32)

    params_f32 = make_params(kp, num_inputs, hidden_size, encode_size)
    params_pad = pad_params_for_kernel(params_f32, num_inputs, encode_size)

    code, out = aesn_discriminator_forward(
        x, params_pad, num_inputs=num_inputs, encode_size=encode_size, tile_b=512)
    jax.block_until_ready((code, out))

    code_ref, out_ref = _ref_forward(x, params_f32)
    assert code.shape == (batch, encode_size)
    assert out.shape == (batch, num_inputs)
    # bf16 matmul operands with f32 accumulation + bf16 output store ->
    # ~1e-2 abs deviation from the pure-f32 reference; tolerance set accordingly.
    assert jnp.allclose(code, code_ref, atol=5e-2, rtol=5e-2), \
        float(jnp.max(jnp.abs(code - code_ref)))
    assert jnp.allclose(out, out_ref, atol=5e-2, rtol=5e-2), \
        float(jnp.max(jnp.abs(out - out_ref)))

    print("KERNEL_OK")
</pallas_src>

<mosaic_0001>
module attributes {stable_mosaic.version = 11 : i64} {
  func.func @_aesn_kernel(%arg0: i32, %arg1: memref<512x32xf32, #tpu.memory_space<vmem>>, %arg2: memref<32x128xbf16, #tpu.memory_space<vmem>>, %arg3: memref<1x128xf32, #tpu.memory_space<vmem>>, %arg4: memref<128x128xbf16, #tpu.memory_space<vmem>>, %arg5: memref<1x128xf32, #tpu.memory_space<vmem>>, %arg6: memref<128x128xbf16, #tpu.memory_space<vmem>>, %arg7: memref<1x128xf32, #tpu.memory_space<vmem>>, %arg8: memref<128x128xbf16, #tpu.memory_space<vmem>>, %arg9: memref<1x128xf32, #tpu.memory_space<vmem>>, %arg10: memref<128x128xbf16, #tpu.memory_space<vmem>>, %arg11: memref<1x128xf32, #tpu.memory_space<vmem>>, %arg12: memref<128x128xbf16, #tpu.memory_space<vmem>>, %arg13: memref<1x128xf32, #tpu.memory_space<vmem>>, %arg14: memref<512x128xbf16, #tpu.memory_space<vmem>>) attributes {dimension_semantics = [#tpu.dimension_semantics<parallel>], iteration_bounds = array<i64: 2>, scalar_prefetch = 0 : i64, scratch_operands = 0 : i64, tpu.core_type = #tpu.core_type<tc>, window_params = [{transform_indices = @transform_0, window_bounds = array<i64: 512, 32>}, {pipeline_mode = #tpu.pipeline_mode<synchronous>, transform_indices = @transform_1, window_bounds = array<i64: 32, 128>}, {pipeline_mode = #tpu.pipeline_mode<synchronous>, transform_indices = @transform_2, window_bounds = array<i64: 1, 128>}, {pipeline_mode = #tpu.pipeline_mode<synchronous>, transform_indices = @transform_3, window_bounds = array<i64: 128, 128>}, {pipeline_mode = #tpu.pipeline_mode<synchronous>, transform_indices = @transform_4, window_bounds = array<i64: 1, 128>}, {pipeline_mode = #tpu.pipeline_mode<synchronous>, transform_indices = @transform_5, window_bounds = array<i64: 128, 128>}, {pipeline_mode = #tpu.pipeline_mode<synchronous>, transform_indices = @transform_6, window_bounds = array<i64: 1, 128>}, {pipeline_mode = #tpu.pipeline_mode<synchronous>, transform_indices = @transform_7, window_bounds = array<i64: 128, 128>}, {pipeline_mode = #tpu.pipeline_mode<synchronous>, transform_indices = @transform_8, window_bounds = array<i64: 1, 128>}, {pipeline_mode = #tpu.pipeline_mode<synchronous>, transform_indices = @transform_9, window_bounds = array<i64: 128, 128>}, {pipeline_mode = #tpu.pipeline_mode<synchronous>, transform_indices = @transform_10, window_bounds = array<i64: 1, 128>}, {pipeline_mode = #tpu.pipeline_mode<synchronous>, transform_indices = @transform_11, window_bounds = array<i64: 128, 128>}, {pipeline_mode = #tpu.pipeline_mode<synchronous>, transform_indices = @transform_12, window_bounds = array<i64: 1, 128>}, {transform_indices = @transform_13, window_bounds = array<i64: 512, 128>}]} {
    %c0 = arith.constant 0 : index
    %c0_0 = arith.constant 0 : index
    %0 = vector.load %arg1[%c0, %c0_0] : memref<512x32xf32, #tpu.memory_space<vmem>>, vector<512x32xf32>
    %1 = arith.truncf %0 : vector<512x32xf32> to vector<512x32xbf16>
    %c0_1 = arith.constant 0 : index
    %c0_2 = arith.constant 0 : index
    %2 = vector.load %arg2[%c0_1, %c0_2] : memref<32x128xbf16, #tpu.memory_space<vmem>>, vector<32x128xbf16>
    %cst = arith.constant dense<0.000000e+00> : vector<512x128xf32>
    %3 = tpu.matmul %1, %2, %cst {dimension_numbers = #tpu.dot_dimension_numbers<[1], [0], [0], [1], [0, 0, 1, 1], [], []>} : vector<512x32xbf16>, vector<32x128xbf16>, vector<512x128xf32> -> vector<512x128xf32>
    %c0_3 = arith.constant 0 : index
    %c0_4 = arith.constant 0 : index
    %4 = vector.load %arg3[%c0_3, %c0_4] : memref<1x128xf32, #tpu.memory_space<vmem>>, vector<1x128xf32>
    %5 = vector.broadcast %4 : vector<1x128xf32> to vector<512x128xf32>
    %6 = arith.addf %3, %5 : vector<512x128xf32>
    %7 = arith.truncf %6 : vector<512x128xf32> to vector<512x128xbf16>
    %8 = math.tanh %7 : vector<512x128xbf16>
    %c0_5 = arith.constant 0 : index
    %c0_6 = arith.constant 0 : index
    %9 = vector.load %arg4[%c0_5, %c0_6] : memref<128x128xbf16, #tpu.memory_space<vmem>>, vector<128x128xbf16>
    %cst_7 = arith.constant dense<0.000000e+00> : vector<512x128xf32>
    %10 = tpu.matmul %8, %9, %cst_7 {dimension_numbers = #tpu.dot_dimension_numbers<[1], [0], [0], [1], [0, 0, 1, 1], [], []>} : vector<512x128xbf16>, vector<128x128xbf16>, vector<512x128xf32> -> vector<512x128xf32>
    %c0_8 = arith.constant 0 : index
    %c0_9 = arith.constant 0 : index
    %11 = vector.load %arg5[%c0_8, %c0_9] : memref<1x128xf32, #tpu.memory_space<vmem>>, vector<1x128xf32>
    %12 = vector.broadcast %11 : vector<1x128xf32> to vector<512x128xf32>
    %13 = arith.addf %10, %12 : vector<512x128xf32>
    %14 = arith.truncf %13 : vector<512x128xf32> to vector<512x128xbf16>
    %15 = math.tanh %14 : vector<512x128xbf16>
    %c0_10 = arith.constant 0 : index
    %c0_11 = arith.constant 0 : index
    %16 = vector.load %arg6[%c0_10, %c0_11] : memref<128x128xbf16, #tpu.memory_space<vmem>>, vector<128x128xbf16>
    %cst_12 = arith.constant dense<0.000000e+00> : vector<512x128xf32>
    %17 = tpu.matmul %15, %16, %cst_12 {dimension_numbers = #tpu.dot_dimension_numbers<[1], [0], [0], [1], [0, 0, 1, 1], [], []>} : vector<512x128xbf16>, vector<128x128xbf16>, vector<512x128xf32> -> vector<512x128xf32>
    %c0_13 = arith.constant 0 : index
    %c0_14 = arith.constant 0 : index
    %18 = vector.load %arg7[%c0_13, %c0_14] : memref<1x128xf32, #tpu.memory_space<vmem>>, vector<1x128xf32>
    %19 = vector.broadcast %18 : vector<1x128xf32> to vector<512x128xf32>
    %20 = arith.addf %17, %19 : vector<512x128xf32>
    %21 = arith.truncf %20 : vector<512x128xf32> to vector<512x128xbf16>
    %c0_15 = arith.constant 0 : index
    %c0_16 = arith.constant 0 : index
    %22 = vector.load %arg8[%c0_15, %c0_16] : memref<128x128xbf16, #tpu.memory_space<vmem>>, vector<128x128xbf16>
    %cst_17 = arith.constant dense<0.000000e+00> : vector<512x128xf32>
    %23 = tpu.matmul %21, %22, %cst_17 {dimension_numbers = #tpu.dot_dimension_numbers<[1], [0], [0], [1], [0, 0, 1, 1], [], []>} : vector<512x128xbf16>, vector<128x128xbf16>, vector<512x128xf32> -> vector<512x128xf32>
    %c0_18 = arith.constant 0 : index
    %c0_19 = arith.constant 0 : index
    %24 = vector.load %arg9[%c0_18, %c0_19] : memref<1x128xf32, #tpu.memory_space<vmem>>, vector<1x128xf32>
    %25 = vector.broadcast %24 : vector<1x128xf32> to vector<512x128xf32>
    %26 = arith.addf %23, %25 : vector<512x128xf32>
    %27 = arith.truncf %26 : vector<512x128xf32> to vector<512x128xbf16>
    %28 = math.tanh %27 : vector<512x128xbf16>
    %c0_20 = arith.constant 0 : index
    %c0_21 = arith.constant 0 : index
    %29 = vector.load %arg10[%c0_20, %c0_21] : memref<128x128xbf16, #tpu.memory_space<vmem>>, vector<128x128xbf16>
    %cst_22 = arith.constant dense<0.000000e+00> : vector<512x128xf32>
    %30 = tpu.matmul %28, %29, %cst_22 {dimension_numbers = #tpu.dot_dimension_numbers<[1], [0], [0], [1], [0, 0, 1, 1], [], []>} : vector<512x128xbf16>, vector<128x128xbf16>, vector<512x128xf32> -> vector<512x128xf32>
    %c0_23 = arith.constant 0 : index
    %c0_24 = arith.constant 0 : index
    %31 = vector.load %arg11[%c0_23, %c0_24] : memref<1x128xf32, #tpu.memory_space<vmem>>, vector<1x128xf32>
    %32 = vector.broadcast %31 : vector<1x128xf32> to vector<512x128xf32>
    %33 = arith.addf %30, %32 : vector<512x128xf32>
    %34 = arith.truncf %33 : vector<512x128xf32> to vector<512x128xbf16>
    %35 = math.tanh %34 : vector<512x128xbf16>
    %c0_25 = arith.constant 0 : index
    %c0_26 = arith.constant 0 : index
    %36 = vector.load %arg12[%c0_25, %c0_26] : memref<128x128xbf16, #tpu.memory_space<vmem>>, vector<128x128xbf16>
    %cst_27 = arith.constant dense<0.000000e+00> : vector<512x128xf32>
    %37 = tpu.matmul %35, %36, %cst_27 {dimension_numbers = #tpu.dot_dimension_numbers<[1], [0], [0], [1], [0, 0, 1, 1], [], []>} : vector<512x128xbf16>, vector<128x128xbf16>, vector<512x128xf32> -> vector<512x128xf32>
    %c0_28 = arith.constant 0 : index
    %c0_29 = arith.constant 0 : index
    %38 = vector.load %arg13[%c0_28, %c0_29] : memref<1x128xf32, #tpu.memory_space<vmem>>, vector<1x128xf32>
    %39 = vector.broadcast %38 : vector<1x128xf32> to vector<512x128xf32>
    %40 = arith.addf %37, %39 : vector<512x128xf32>
    %41 = arith.addf %20, %40 : vector<512x128xf32>
    %42 = arith.truncf %41 : vector<512x128xf32> to vector<512x128xbf16>
    %c0_30 = arith.constant 0 : index
    %c0_31 = arith.constant 0 : index
    %43 = vector.load %arg14[%c0_30, %c0_31] : memref<512x128xbf16, #tpu.memory_space<vmem>>, vector<512x128xbf16>
    tpu.vector_store %arg14[%c0_30, %c0_31], %42 {strides = array<i32>} : memref<512x128xbf16, #tpu.memory_space<vmem>>, vector<512x128xbf16>,
    return
  }
  func.func @transform_0(%arg0: i32) -> (i32, i32) {
    %c0_i32 = arith.constant 0 : i32
    %c0_i32_0 = arith.constant 0 : i32
    return %arg0, %c0_i32 : i32, i32
  }
  func.func @transform_1(%arg0: i32) -> (i32, i32) {
    %c0_i32 = arith.constant 0 : i32
    %c0_i32_0 = arith.constant 0 : i32
    %c0_i32_1 = arith.constant 0 : i32
    return %c0_i32, %c0_i32_0 : i32, i32
  }
  func.func @transform_2(%arg0: i32) -> (i32, i32) {
    %c0_i32 = arith.constant 0 : i32
    %c0_i32_0 = arith.constant 0 : i32
    %c0_i32_1 = arith.constant 0 : i32
    return %c0_i32, %c0_i32_0 : i32, i32
  }
  func.func @transform_3(%arg0: i32) -> (i32, i32) {
    %c0_i32 = arith.constant 0 : i32
    %c0_i32_0 = arith.constant 0 : i32
    %c0_i32_1 = arith.constant 0 : i32
    return %c0_i32, %c0_i32_0 : i32, i32
  }
  func.func @transform_4(%arg0: i32) -> (i32, i32) {
    %c0_i32 = arith.constant 0 : i32
    %c0_i32_0 = arith.constant 0 : i32
    %c0_i32_1 = arith.constant 0 : i32
    return %c0_i32, %c0_i32_0 : i32, i32
  }
  func.func @transform_5(%arg0: i32) -> (i32, i32) {
    %c0_i32 = arith.constant 0 : i32
    %c0_i32_0 = arith.constant 0 : i32
    %c0_i32_1 = arith.constant 0 : i32
    return %c0_i32, %c0_i32_0 : i32, i32
  }
  func.func @transform_6(%arg0: i32) -> (i32, i32) {
    %c0_i32 = arith.constant 0 : i32
    %c0_i32_0 = arith.constant 0 : i32
    %c0_i32_1 = arith.constant 0 : i32
    return %c0_i32, %c0_i32_0 : i32, i32
  }
  func.func @transform_7(%arg0: i32) -> (i32, i32) {
    %c0_i32 = arith.constant 0 : i32
    %c0_i32_0 = arith.constant 0 : i32
    %c0_i32_1 = arith.constant 0 : i32
    return %c0_i32, %c0_i32_0 : i32, i32
  }
  func.func @transform_8(%arg0: i32) -> (i32, i32) {
    %c0_i32 = arith.constant 0 : i32
    %c0_i32_0 = arith.constant 0 : i32
    %c0_i32_1 = arith.constant 0 : i32
    return %c0_i32, %c0_i32_0 : i32, i32
  }
  func.func @transform_9(%arg0: i32) -> (i32, i32) {
    %c0_i32 = arith.constant 0 : i32
    %c0_i32_0 = arith.constant 0 : i32
    %c0_i32_1 = arith.constant 0 : i32
    return %c0_i32, %c0_i32_0 : i32, i32
  }
  func.func @transform_10(%arg0: i32) -> (i32, i32) {
    %c0_i32 = arith.constant 0 : i32
    %c0_i32_0 = arith.constant 0 : i32
    %c0_i32_1 = arith.constant 0 : i32
    return %c0_i32, %c0_i32_0 : i32, i32
  }
  func.func @transform_11(%arg0: i32) -> (i32, i32) {
    %c0_i32 = arith.constant 0 : i32
    %c0_i32_0 = arith.constant 0 : i32
    %c0_i32_1 = arith.constant 0 : i32
    return %c0_i32, %c0_i32_0 : i32, i32
  }
  func.func @transform_12(%arg0: i32) -> (i32, i32) {
    %c0_i32 = arith.constant 0 : i32
    %c0_i32_0 = arith.constant 0 : i32
    %c0_i32_1 = arith.constant 0 : i32
    return %c0_i32, %c0_i32_0 : i32, i32
  }
  func.func @transform_13(%arg0: i32) -> (i32, i32) {
    %c0_i32 = arith.constant 0 : i32
    %c0_i32_0 = arith.constant 0 : i32
    return %arg0, %c0_i32 : i32, i32
  }
}

</mosaic_0001>

<bundles_post_ra>
// kernel: tpu_custom_call.1
= control target key start
LH: loop header
LB: loop body
LE: loop exit
PB: predicated region body
PF: predicated region fallthrough
CT: control target
= control target key end

     0   :  { %s6137_s0 = inlined_call_operand.vmem [shape: f32[1024,32], index: 0, kind: input, shape index: {}]   ;;  %s6138_s1 = inlined_call_operand.vmem [shape: bf16[32,128], index: 1, kind: input, shape index: {}]   ;;  %s6139_s2 = inlined_call_operand.vmem [shape: f32[1,128], index: 2, kind: input, shape index: {}]   ;;  %s6140_s3 = inlined_call_operand.vmem [shape: bf16[128,128], index: 3, kind: input, shape index: {}]   ;;  %s6141_s4 = inlined_call_operand.vmem [shape: f32[1,128], index: 4, kind: input, shape index: {}]   ;;  %s6142_s5 = inlined_call_operand.vmem [shape: bf16[128,128], index: 5, kind: input, shape index: {}]   ;;  %s6143_s6 = inlined_call_operand.vmem [shape: f32[1,128], index: 6, kind: input, shape index: {}]   ;;  %s6144_s7 = inlined_call_operand.vmem [shape: bf16[128,128], index: 7, kind: input, shape index: {}]   ;;  %s6145_s8 = inlined_call_operand.vmem [shape: f32[1,128], index: 8, kind: input, shape index: {}]   ;;  %s6146_s9 = inlined_call_operand.vmem [shape: bf16[128,128], index: 9, kind: input, shape index: {}]   ;;  %s6147_s10 = inlined_call_operand.vmem [shape: f32[1,128], index: 10, kind: input, shape index: {}]   ;;  %s6148_s11 = inlined_call_operand.vmem [shape: bf16[128,128], index: 11, kind: input, shape index: {}]   ;;  %s6149_s12 = inlined_call_operand.vmem [shape: f32[1,128], index: 12, kind: input, shape index: {}]   ;;  %s6150_s13 = inlined_call_operand.hbm [shape: bf16[1024,128], index: 13, kind: output, shape index: {}]  }
   0x1   :  { %6172 = sst [smem:[#allocation27_spill]] %s6138_s1 }
   0x2   :  { %18 = vsyncpa [#allocation3], 0 }
   0x3   :  { %20 = vsyncpa [#allocation3 + $0x1], 0  ;;  %s5102_s25 = smov 0   ;;  %s5104_s26 = smov 0  }
   0x4   :  { %s5106_s27 = smov 0   ;;  %s5108_s28 = smov 0  }
   0x5 LB: > { %6173 = sst [smem:[#allocation5_spill]] %s5023_s27  ;;  %s5123_s29 = sadd.s32 4294967295, %s5027_s28   ;;  %s5027_s28 = sphi %s5108_s28, %s6222_s28   ;;  %s5023_s27 = sphi %s5106_s27, %s6219_s27   ;;  %s5019_s26 = sphi %s5104_s26, %s6221_s26   ;;  %s5015_s25 = sphi %s5102_s25, %s6220_s25  }
   0x6   : > { %s3496_s30 = sadd.s32 4294967294, %s5027_s28   ;;  %s5127_s14 = sadd.s32 1, %s5027_s28  }
   0x7   : > { %s311_s15 = sadd.s32 1, %s5023_s27  ;;  %s308_s16 = ssub.s32 %s5027_s28, %s5127_s14 }
   0x8   : > { %p321_p0 = scmp.ne.s32.totalorder %s5023_s27, %s5019_s26  ;;  %p309_p1 = scmp.eq.s32.totalorder %s308_s16, 0 }
   0x9   : > { %p322_p2 = scmp.eq.s32.totalorder %s5123_s29, 1  ;;  %p327_p3 = scmp.ne.s32.totalorder %s5019_s26, %s5015_s25 }
   0xa   : > { %p328_p4 = scmp.eq.s32.totalorder %s3496_s30, 1  ;;  %p3499_p7 = scmp.ge.s32.totalorder %s5027_s28, 1 }
   0xb   : > { %s5138_s17 = scalar_select %p309_p1, %s5023_s27, %s311_s15  }
   0xc   : > { %p5140_p5 = por %p322_p2, %p321_p0  ;;  %p5144_p6 = por %p328_p4, %p327_p3 }
   0xd   : > { %6174 = sst [smem:[#allocation6_spill]] %s5138_s17  ;;  %p391_p8 = scmp.lt.s32.totalorder %s5027_s28, 3 }
   0xf   : > { %p392_p9 = pnand %p3499_p7, %p391_p8 }
  0x11   : > { %395 = sbr.rel (%p392_p9) target bundleno = 1543 (0x607), region = 72 }
  0x18   : > { %s6177_s1 = sld [smem:[#allocation27_spill]]  ;;  %s3501_s22 = sshll.u32 %s5123_s29, 6  ;;  %v4669_v2 = vld [vmem:[%s6140_s3] sm:$0xff]   ;;  %v4670_v3 = vld [vmem:[%s6140_s3 + $0x8] sm:$0xff]   ;;  %v4671_v4 = vld [vmem:[%s6140_s3 + $0x10] sm:$0xff]   ;;  %vm562_vm0 = vcmask 261120  }
  0x19   : > { %p436_p10 = scmp.lt.s32.totalorder %s3501_s22, 127  ;;  %4210 = vmatprep.subr.bf16.mxu1 %v4669_v2  ;;  %s432_s24 = sand.u32 1, %s5019_s26  }
  0x1a   : > { %4211 = vmatpush3.bf16.msra.mxu1 %v4669_v2  ;;  %s3500_s27 = sshll.u32 %s432_s24, 8  ;;  %s5029_s21 = smov [#allocation2]  }
  0x1b   : > { %s6224_s22 = smov (!%p436_p10, %s3501_s22), 127  ;;  %4212 = vmatprep.subr.bf16.mxu1 %v4670_v3  ;;  %s5931_s17 = scalar_lea.vmem [#allocation2], %s3500_s27 }
  0x1c   : > { %s3502_s20 = sshll.u32 %s6224_s22, 3  ;;  %s3716_s22 = sshll.u32 %s5123_s29, 12 }
  0x1d   : > { %s3434_s30 = sshll.u32 %s5931_s17, 4  ;;  %s6088_s16 = scalar_lea.hbm %s6150_s13, %s3716_s22  ;;  %s6090_s30 = int_to_ptr.vmem [resolvable:$true] %s3434_s30 }
  0x1e   : > { %v4667_v0 = vld [vmem:[%s6177_s1] sm:$0xff]   ;;  %v4668_v1 = vld [vmem:[%s6177_s1 + $0x8] sm:$0xff]   ;;  %s5169_s1 = scalar_lea.vmem %s6137_s0, %s3502_s20  ;;  %4213 = vmatpush3.bf16.msra.mxu1 %v4670_v3  ;;  %s6096_s29 = scalar_lea.sflag [#allocation3], %s432_s24 }
  0x1f   : > { %4142 = vmatprep.subr.bf16.mxu0 %v4667_v0  ;;  %v443_v5 = vld [vmem:[%s5169_s1] sm:$0xff]  ;;  %v444_v6 = vld [vmem:[%s5169_s1 + $0x8] sm:$0xff]  ;;  %v445_v7 = vld [vmem:[%s5169_s1 + $0x10] sm:$0xff]  ;;  %4214 = vmatprep.subr.bf16.mxu1 %v4671_v4  ;;  %s4965_s20 = scalar_lea.vmem %s6090_s30, 4096  ;;  %s4969_s23 = sshll.u32 %s5029_s21, 4  ;;  %s4970_s23 = int_to_ptr.vmem [resolvable:$false] %s4969_s23 }
  0x20   : > { %4143 = vmatpush3.bf16.msra.mxu0 %v4667_v0  ;;  %v507_v8 = vpack.c.bf16 %v444_v6, %v443_v5  ;;  %v446_v9 = vld [vmem:[%s5169_s1 + $0x18] sm:$0xff]  ;;  %v447_v10 = vld [vmem:[%s5169_s1 + $0x20] sm:$0xff]  ;;  %v448_v11 = vld [vmem:[%s5169_s1 + $0x28] sm:$0xff]  ;;  %p4966_p11 = scmp.ne.s32.totalorder %s6090_s30, %s4965_s20  ;;  %s4971_s27 = scalar_lea.vmem %s4970_s23, 8192 }
  0x21   : > { %4144 = vmatprep.subr.bf16.mxu0 %v4668_v1  ;;  %v508_v12 = vpack.c.bf16 %v446_v9, %v445_v7  ;;  %v509_v13 = vpack.c.bf16 %v448_v11, %v447_v10  ;;  %v449_v14 = vld [vmem:[%s5169_s1 + $0x30] sm:$0xff]  ;;  %v450_v15 = vld [vmem:[%s5169_s1 + $0x38] sm:$0xff]  ;;  %v451_v16 = vld [vmem:[%s5169_s1 + $0x40] sm:$0xff]  ;;  %p4972_p0 = scmp.lt.s32.totalorder %s6090_s30, %s4970_s23  ;;  %p4973_p1 = scmp.lt.s32.totalorder %s4971_s27, %s4965_s20 }
  0x22   : > { %4146 = vmatprep.mubr.msk.bf16.mxu0 %vm562_vm0, %v507_v8  ;;  %v452_v17 = vld [vmem:[%s5169_s1 + $0x48] sm:$0xff]  ;;  %4215 = vmatpush3.bf16.msra.mxu1 %v4671_v4  ;;  %v510_v18 = vpack.c.bf16 %v450_v15, %v449_v14  ;;  %v453_v20 = vld [vmem:[%s5169_s1 + $0x50] sm:$0xff]  ;;  %v454_v21 = vld [vmem:[%s5169_s1 + $0x58] sm:$0xff]  ;;  %p4967_p12 = pnand %p4966_p11, %p5140_p5 }
  0x23   : > { %v511_v19 = vpack.c.bf16 %v452_v17, %v451_v16  ;;  %v455_v22 = vld [vmem:[%s5169_s1 + $0x60] sm:$0xff]  ;;  %v456_v23 = vld [vmem:[%s5169_s1 + $0x68] sm:$0xff]  ;;  %v512_v24 = vpack.c.bf16 %v454_v21, %v453_v20  ;;  %v457_v26 = vld [vmem:[%s5169_s1 + $0x70] sm:$0xff]  ;;  %p4974_p2 = por %p4973_p1, %p4972_p0 }
  0x24   : > { %4145 = vmatpush3.bf16.msra.mxu0 %v4668_v1  ;;  %v513_v25 = vpack.c.bf16 %v456_v23, %v455_v22  ;;  %v458_v27 = vld [vmem:[%s5169_s1 + $0x78] sm:$0xff]  ;;  %v459_v28 = vld [vmem:[%s5169_s1 + $0x80] sm:$0xff]  ;;  %v460_v29 = vld [vmem:[%s5169_s1 + $0x88] sm:$0xff]  ;;  %p4968_p13 = pneg %p4967_p12 }
  0x25   : > { %v514_v30 = vpack.c.bf16 %v458_v27, %v457_v26  ;;  %v515_v31 = vpack.c.bf16 %v460_v29, %v459_v28  ;;  %v461_v32 = vld [vmem:[%s5169_s1 + $0x90] sm:$0xff]  ;;  %v462_v33 = vld [vmem:[%s5169_s1 + $0x98] sm:$0xff]  ;;  %v463_v34 = vld [vmem:[%s5169_s1 + $0xa0] sm:$0xff] }
  0x26   : > { %v464_v35 = vld [vmem:[%s5169_s1 + $0xa8] sm:$0xff]  ;;  %v516_v36 = vpack.c.bf16 %v462_v33, %v461_v32  ;;  %v465_v38 = vld [vmem:[%s5169_s1 + $0xb0] sm:$0xff]  ;;  %v466_v39 = vld [vmem:[%s5169_s1 + $0xb8] sm:$0xff]  ;;  %p4975_p3 = pnand %p4974_p2, %p4968_p13 }
  0x27   : > { %4147 = vmatmul.mubr.msk.bf16.vlgmr.msra.gmra.mrb[0].mxu0 %vm562_vm0, %v508_v12  ;;  %v517_v37 = vpack.c.bf16 %v464_v35, %v463_v34  ;;  %v467_v40 = vld [vmem:[%s5169_s1 + $0xc0] sm:$0xff]  ;;  %v468_v41 = vld [vmem:[%s5169_s1 + $0xc8] sm:$0xff]  ;;  %v518_v42 = vpack.c.bf16 %v466_v39, %v465_v38  ;;  %v469_v44 = vld [vmem:[%s5169_s1 + $0xd0] sm:$0xff] }
  0x28   : > { %4150 = vmatprep.mubr.msk.bf16.mxu0 %vm562_vm0, %v509_v13  ;;  %v519_v43 = vpack.c.bf16 %v468_v41, %v467_v40  ;;  %v470_v45 = vld [vmem:[%s5169_s1 + $0xd8] sm:$0xff]  ;;  %v471_v46 = vld [vmem:[%s5169_s1 + $0xe0] sm:$0xff]  ;;  %v472_v47 = vld [vmem:[%s5169_s1 + $0xe8] sm:$0xff] }
  0x29   : > { %v520_v48 = vpack.c.bf16 %v470_v45, %v469_v44  ;;  %v521_v49 = vpack.c.bf16 %v472_v47, %v471_v46  ;;  %v473_v50 = vld [vmem:[%s5169_s1 + $0xf0] sm:$0xff]  ;;  %v474_v51 = vld [vmem:[%s5169_s1 + $0xf8] sm:$0xff]  ;;  %v475_v52 = vld [vmem:[%s5169_s1 + $0x100] sm:$0xff] }
  0x2a   : > { %v476_v53 = vld [vmem:[%s5169_s1 + $0x108] sm:$0xff]  ;;  %v522_v54 = vpack.c.bf16 %v474_v51, %v473_v50  ;;  %v477_v56 = vld [vmem:[%s5169_s1 + $0x110] sm:$0xff]  ;;  %v478_v57 = vld [vmem:[%s5169_s1 + $0x118] sm:$0xff] }
  0x2b   : > { %v523_v55 = vpack.c.bf16 %v476_v53, %v475_v52  ;;  %v479_v58 = vld [vmem:[%s5169_s1 + $0x120] sm:$0xff]  ;;  %v480_v59 = vld [vmem:[%s5169_s1 + $0x128] sm:$0xff]  ;;  %v524_v60 = vpack.c.bf16 %v478_v57, %v477_v56  ;;  %v481_v62 = vld [vmem:[%s5169_s1 + $0x130] sm:$0xff] }
  0x2c   : > { %v525_v61 = vpack.c.bf16 %v480_v59, %v479_v58  ;;  %v482_v63 = vld [vmem:[%s5169_s1 + $0x138] sm:$0xff]  ;;  %v483_v0 = vld [vmem:[%s5169_s1 + $0x140] sm:$0xff]  ;;  %v484_v1 = vld [vmem:[%s5169_s1 + $0x148] sm:$0xff] }
  0x2d   : > { %v526_v2 = vpack.c.bf16 %v482_v63, %v481_v62  ;;  %v527_v3 = vpack.c.bf16 %v484_v1, %v483_v0  ;;  %v485_v4 = vld [vmem:[%s5169_s1 + $0x150] sm:$0xff]  ;;  %v486_v5 = vld [vmem:[%s5169_s1 + $0x158] sm:$0xff]  ;;  %v487_v6 = vld [vmem:[%s5169_s1 + $0x160] sm:$0xff] }
  0x2e   : > { %v488_v7 = vld [vmem:[%s5169_s1 + $0x168] sm:$0xff]  ;;  %v528_v8 = vpack.c.bf16 %v486_v5, %v485_v4  ;;  %v489_v10 = vld [vmem:[%s5169_s1 + $0x170] sm:$0xff]  ;;  %v490_v11 = vld [vmem:[%s5169_s1 + $0x178] sm:$0xff] }
  0x2f   : > { %4151 = vmatmul.mubr.msk.bf16.gmra.mrb[4].mxu0 %vm562_vm0, %v510_v18  ;;  %v529_v9 = vpack.c.bf16 %v488_v7, %v487_v6  ;;  %v491_v12 = vld [vmem:[%s5169_s1 + $0x180] sm:$0xff]  ;;  %v492_v13 = vld [vmem:[%s5169_s1 + $0x188] sm:$0xff]  ;;  %v4672_v14 = vld [vmem:[%s6140_s3 + $0x18] sm:$0xff]   ;;  %v530_v15 = vpack.c.bf16 %v490_v11, %v489_v10 }
  0x30   : > { %4154 = vmatprep.mubr.msk.bf16.mxu0 %vm562_vm0, %v511_v19  ;;  %4216 = vmatprep.subr.bf16.mxu1 %v4672_v14  ;;  %v531_v16 = vpack.c.bf16 %v492_v13, %v491_v12  ;;  %v4673_v17 = vld [vmem:[%s6140_s3 + $0x20] sm:$0xff]   ;;  %v493_v18 = vld [vmem:[%s5169_s1 + $0x190] sm:$0xff]  ;;  %v494_v19 = vld [vmem:[%s5169_s1 + $0x198] sm:$0xff] }
  0x31   : > { %4217 = vmatpush3.bf16.msra.mxu1 %v4672_v14  ;;  %v495_v20 = vld [vmem:[%s5169_s1 + $0x1a0] sm:$0xff]  ;;  %v496_v21 = vld [vmem:[%s5169_s1 + $0x1a8] sm:$0xff]  ;;  %v532_v23 = vpack.c.bf16 %v494_v19, %v493_v18  ;;  %v497_v26 = vld [vmem:[%s5169_s1 + $0x1b0] sm:$0xff] }
  0x32   : > { %4218 = vmatprep.subr.bf16.mxu1 %v4673_v17  ;;  %v4674_v22 = vld [vmem:[%s6140_s3 + $0x28] sm:$0xff]   ;;  %v498_v27 = vld [vmem:[%s5169_s1 + $0x1b8] sm:$0xff]  ;;  %v499_v28 = vld [vmem:[%s5169_s1 + $0x1c0] sm:$0xff] }
  0x33   : > { %v500_v29 = vld [vmem:[%s5169_s1 + $0x1c8] sm:$0xff]  ;;  %v501_v33 = vld [vmem:[%s5169_s1 + $0x1d0] sm:$0xff]  ;;  %v502_v34 = vld [vmem:[%s5169_s1 + $0x1d8] sm:$0xff] }
  0x34   : > { %v535_v32 = vpack.c.bf16 %v500_v29, %v499_v28  ;;  %v503_v35 = vld [vmem:[%s5169_s1 + $0x1e0] sm:$0xff]  ;;  %v505_v39 = vld [vmem:[%s5169_s1 + $0x1f0] sm:$0xff]  ;;  %v506_v40 = vld [vmem:[%s5169_s1 + $0x1f8] sm:$0xff] }
  0x35   : > { %4219 = vmatpush3.bf16.msra.mxu1 %v4673_v17  ;;  %v538_v41 = vpack.c.bf16 %v506_v40, %v505_v39  ;;  %v4677_v44 = vld [vmem:[%s6142_s5] sm:$0xff]   ;;  %v4678_v62 = vld [vmem:[%s6142_s5 + $0x8] sm:$0xff]   ;;  %v4679_v0 = vld [vmem:[%s6142_s5 + $0x10] sm:$0xff]  }
  0x36   : > { %4220 = vmatprep.subr.bf16.mxu1 %v4674_v22  ;;  %4290 = vmatprep.subr.bf16.mxu0 %v4677_v44  ;;  %v4681_v13 = vld [vmem:[%s6142_s5 + $0x20] sm:$0xff]   ;;  %v4682_v17 = vld [vmem:[%s6142_s5 + $0x28] sm:$0xff]  }
  0x37   : > { %4155 = vmatmul.mubr.msk.bf16.gmra.mrb[8].mxu0 %vm562_vm0, %v512_v24  ;;  %v533_v24 = vpack.c.bf16 %v496_v21, %v495_v20 }
  0x38   : > { %4158 = vmatprep.mubr.msk.bf16.mxu0 %vm562_vm0, %v513_v25  ;;  %v4675_v25 = vld [vmem:[%s6140_s3 + $0x30] sm:$0xff]   ;;  %4291 = vmatpush3.bf16.msra.mxu0 %v4677_v44 }
  0x39   : > { %4221 = vmatpush3.bf16.msra.mxu1 %v4674_v22  ;;  %4292 = vmatprep.subr.bf16.mxu0 %v4678_v62 }
  0x3a   : > { %4222 = vmatprep.subr.bf16.mxu1 %v4675_v25 }
  0x3c   : > { %4293 = vmatpush3.bf16.msra.mxu0 %v4678_v62 }
  0x3d   : > { %4223 = vmatpush3.bf16.msra.mxu1 %v4675_v25  ;;  %4294 = vmatprep.subr.bf16.mxu0 %v4679_v0 }
  0x3f   : > { %4159 = vmatmul.mubr.msk.bf16.gmra.mrb[12].mxu0 %vm562_vm0, %v514_v30  ;;  %v4676_v30 = vld [vmem:[%s6140_s3 + $0x38] sm:$0xff]  }
  0x40   : > { %4162 = vmatprep.mubr.msk.bf16.mxu0 %vm562_vm0, %v515_v31  ;;  %v534_v31 = vpack.c.bf16 %v498_v27, %v497_v26  ;;  %4224 = vmatprep.subr.bf16.mxu1 %v4676_v30  ;;  %v4683_v27 = vld [vmem:[%s6142_s5 + $0x30] sm:$0xff]  }
  0x41   : > { %4225 = vmatpush3.bf16.msra.mxu1 %v4676_v30  ;;  %4295 = vmatpush3.bf16.msra.mxu0 %v4679_v0 }
  0x47   : > { %4163 = vmatmul.mubr.msk.bf16.gmra.mrb[16].mxu0 %vm562_vm0, %v516_v36  ;;  %v504_v36 = vld [vmem:[%s5169_s1 + $0x1e8] sm:$0xff] }
  0x48   : > { %4166 = vmatprep.mubr.msk.bf16.mxu0 %vm562_vm0, %v517_v37  ;;  %v536_v37 = vpack.c.bf16 %v502_v34, %v501_v33  ;;  %v537_v38 = vpack.c.bf16 %v504_v36, %v503_v35 }
  0x4f   : > { %4167 = vmatmul.mubr.msk.bf16.gmra.mrb[20].mxu0 %vm562_vm0, %v518_v42 }
  0x50   : > { %4170 = vmatprep.mubr.msk.bf16.mxu0 %vm562_vm0, %v519_v43  ;;  %v5285_v43 = vld [vmem:[%s6139_s2] ss:$0 sm:$0xff] }
  0x57   : > { %4171 = vmatmul.mubr.msk.bf16.gmra.mrb[24].mxu0 %vm562_vm0, %v520_v48 }
  0x58   : > { %4174 = vmatprep.mubr.msk.bf16.mxu0 %vm562_vm0, %v521_v49 }
  0x5f   : > { %4175 = vmatmul.mubr.msk.bf16.gmra.mrb[28].mxu0 %vm562_vm0, %v522_v54 }
  0x60   : > { %4178 = vmatprep.mubr.msk.bf16.mxu0 %vm562_vm0, %v523_v55 }
  0x67   : > { %4179 = vmatmul.mubr.msk.bf16.gmra.mrb[32].mxu0 %vm562_vm0, %v524_v60 }
  0x68   : > { %4182 = vmatprep.mubr.msk.bf16.mxu0 %vm562_vm0, %v525_v61 }
  0x6f   : > { %4183 = vmatmul.mubr.msk.bf16.gmra.mrb[36].mxu0 %vm562_vm0, %v526_v2 }
  0x70   : > { %4186 = vmatprep.mubr.msk.bf16.mxu0 %vm562_vm0, %v527_v3  ;;  %v4680_v3 = vld [vmem:[%s6142_s5 + $0x18] sm:$0xff]  }
  0x71   : > { %4296 = vmatprep.subr.bf16.mxu0 %v4680_v3 }
  0x72   : > { %4297 = vmatpush3.bf16.msra.mxu0 %v4680_v3 }
  0x73   : > { %4298 = vmatprep.subr.bf16.mxu0 %v4681_v13 }
  0x76   : > { %4299 = vmatpush3.bf16.msra.mxu0 %v4681_v13 }
  0x77   : > { %4187 = vmatmul.mubr.msk.bf16.gmra.mrb[40].mxu0 %vm562_vm0, %v528_v8  ;;  %4300 = vmatprep.subr.bf16.mxu0 %v4682_v17 }
  0x78   : > { %4190 = vmatprep.mubr.msk.bf16.mxu0 %vm562_vm0, %v529_v9 }
  0x7a   : > { %4301 = vmatpush3.bf16.msra.mxu0 %v4682_v17 }
  0x7b   : > { %4302 = vmatprep.subr.bf16.mxu0 %v4683_v27 }
  0x7e   : > { %4303 = vmatpush3.bf16.msra.mxu0 %v4683_v27 }
  0x7f   : > { %4191 = vmatmul.mubr.msk.bf16.gmra.mrb[44].mxu0 %vm562_vm0, %v530_v15 }
  0x80   : > { %4194 = vmatprep.mubr.msk.bf16.mxu0 %vm562_vm0, %v531_v16 }
  0x87   : > { %4195 = vmatmul.mubr.msk.bf16.gmra.mrb[48].mxu0 %vm562_vm0, %v532_v23 }
  0x88   : > { %4198 = vmatprep.mubr.msk.bf16.mxu0 %vm562_vm0, %v533_v24 }
  0x8f   : > { %4199 = vmatmul.mubr.msk.bf16.gmra.mrb[52].mxu0 %vm562_vm0, %v534_v31 }
  0x90   : > { %4202 = vmatprep.mubr.msk.bf16.mxu0 %vm562_vm0, %v535_v32 }
  0x97   : > { %4203 = vmatmul.mubr.msk.bf16.gmra.mrb[56].mxu0 %vm562_vm0, %v536_v37 }
  0x98   : > { %4206 = vmatprep.mubr.msk.bf16.mxu0 %vm562_vm0, %v537_v38 }
  0x9f   : > { %4207 = vmatmul.mubr.msk.bf16.gmra.mrb[60].mxu0 %vm562_vm0, %v538_v41 }
  0xfa   : > { %v4148_v42 = vpop.f32.mrb[0].mxu0 }
  0xfb   : > { %v693_v45 = vpop.f32.mrb[1].mxu0  ;;  %v702_v47 = vadd.f32 %v4148_v42, %v5285_v43 }
  0xfc   : > { %v4149_v46 = vpop.f32.mrb[2].mxu0  ;;  %v694_v50 = vadd.f32 %v5285_v43, %v693_v45 }
  0xfd   : > { %v705_v48 = vadd.f32 %v4149_v46, %v5285_v43  ;;  %v696_v49 = vpop.f32.mrb[3].mxu0 }
  0xfe   : > { %v697_v51 = vadd.f32 %v5285_v43, %v696_v49 }
  0xff   : > { %v949_v52 = vpack.c.bf16 %v705_v48, %v702_v47 }
 0x100   : > { %v948_v53 = vpack.c.bf16 %v697_v51, %v694_v50 }
 0x102   : > { %v4152_v54 = vpop.f32.mrb[4].mxu0  ;;  %4709 = vtanh.bf16 %v948_v53 }
 0x103   : > { %4711 = vtanh.bf16 %v949_v52  ;;  %v709_v55 = vpop.f32.mrb[5].mxu0  ;;  %v718_v57 = vadd.f32 %v4152_v54, %v5285_v43 }
 0x104   : > { %v4153_v56 = vpop.f32.mrb[6].mxu0  ;;  %v710_v60 = vadd.f32 %v5285_v43, %v709_v55 }
 0x105   : > { %v721_v58 = vadd.f32 %v4153_v56, %v5285_v43  ;;  %v712_v59 = vpop.f32.mrb[7].mxu0 }
 0x106   : > { %v713_v61 = vadd.f32 %v5285_v43, %v712_v59 }
 0x107   : > { %v951_v63 = vpack.c.bf16 %v721_v58, %v718_v57 }
 0x108   : > { %v950_v1 = vpack.c.bf16 %v713_v61, %v710_v60 }
 0x10a   : > { %4713 = vtanh.bf16 %v950_v1  ;;  %v4156_v2 = vpop.f32.mrb[8].mxu0 }
 0x10b   : > { %4715 = vtanh.bf16 %v951_v63  ;;  %v725_v4 = vpop.f32.mrb[9].mxu0  ;;  %v734_v7 = vadd.f32 %v4156_v2, %v5285_v43 }
 0x10c   : > { %v4157_v5 = vpop.f32.mrb[10].mxu0  ;;  %v726_v11 = vadd.f32 %v5285_v43, %v725_v4 }
 0x10d   : > { %v4710_v6 = vpop.eup %4709  ;;  %v737_v8 = vadd.f32 %v4157_v5, %v5285_v43  ;;  %v728_v9 = vpop.f32.mrb[11].mxu0 }
 0x10e   : > { %v4712_v10 = vpop.eup %4711  ;;  %v729_v12 = vadd.f32 %v5285_v43, %v728_v9  ;;  %4226 = vmatprep.mubr.bf16.mxu1 %v4710_v6 }
 0x10f   : > { %v953_v14 = vpack.c.bf16 %v737_v8, %v734_v7  ;;  %4227 = vmatmul.mubr.bf16.vlgmr.msra.gmra.mrb[0].mxu1 %v4712_v10 }
 0x110   : > { %v952_v15 = vpack.c.bf16 %v729_v12, %v726_v11 }
 0x112   : > { %4717 = vtanh.bf16 %v952_v15  ;;  %v4160_v16 = vpop.f32.mrb[12].mxu0 }
 0x113   : > { %4719 = vtanh.bf16 %v953_v14  ;;  %v741_v18 = vpop.f32.mrb[13].mxu0  ;;  %v750_v21 = vadd.f32 %v4160_v16, %v5285_v43 }
 0x114   : > { %v4161_v19 = vpop.f32.mrb[14].mxu0  ;;  %v742_v25 = vadd.f32 %v5285_v43, %v741_v18 }
 0x115   : > { %v4714_v20 = vpop.eup %4713  ;;  %v753_v22 = vadd.f32 %v4161_v19, %v5285_v43  ;;  %v744_v23 = vpop.f32.mrb[15].mxu0 }
 0x116   : > { %v4716_v24 = vpop.eup %4715  ;;  %v745_v26 = vadd.f32 %v5285_v43, %v744_v23  ;;  %4230 = vmatprep.mubr.bf16.mxu1 %v4714_v20 }
 0x117   : > { %v955_v28 = vpack.c.bf16 %v753_v22, %v750_v21  ;;  %4231 = vmatmul.mubr.bf16.gmra.mrb[4].mxu1 %v4716_v24 }
 0x118   : > { %v954_v29 = vpack.c.bf16 %v745_v26, %v742_v25 }
 0x11a   : > { %4721 = vtanh.bf16 %v954_v29  ;;  %v4164_v30 = vpop.f32.mrb[16].mxu0 }
 0x11b   : > { %4723 = vtanh.bf16 %v955_v28  ;;  %v757_v31 = vpop.f32.mrb[17].mxu0  ;;  %v766_v34 = vadd.f32 %v4164_v30, %v5285_v43 }
 0x11c   : > { %v4165_v32 = vpop.f32.mrb[18].mxu0  ;;  %v758_v38 = vadd.f32 %v5285_v43, %v757_v31 }
 0x11d   : > { %v4718_v33 = vpop.eup %4717  ;;  %v769_v35 = vadd.f32 %v4165_v32, %v5285_v43  ;;  %v760_v36 = vpop.f32.mrb[19].mxu0 }
 0x11e   : > { %v4720_v37 = vpop.eup %4719  ;;  %v761_v39 = vadd.f32 %v5285_v43, %v760_v36  ;;  %4234 = vmatprep.mubr.bf16.mxu1 %v4718_v33 }
 0x11f   : > { %v957_v40 = vpack.c.bf16 %v769_v35, %v766_v34  ;;  %4235 = vmatmul.mubr.bf16.gmra.mrb[8].mxu1 %v4720_v37 }
 0x120   : > { %v956_v41 = vpack.c.bf16 %v761_v39, %v758_v38 }
 0x122   : > { %4725 = vtanh.bf16 %v956_v41  ;;  %v4168_v42 = vpop.f32.mrb[20].mxu0 }
 0x123   : > { %4727 = vtanh.bf16 %v957_v40  ;;  %v773_v44 = vpop.f32.mrb[21].mxu0  ;;  %v782_v47 = vadd.f32 %v4168_v42, %v5285_v43 }
 0x124   : > { %v4169_v45 = vpop.f32.mrb[22].mxu0  ;;  %v774_v51 = vadd.f32 %v5285_v43, %v773_v44 }
 0x125   : > { %v4722_v46 = vpop.eup %4721  ;;  %v785_v48 = vadd.f32 %v4169_v45, %v5285_v43  ;;  %v776_v49 = vpop.f32.mrb[23].mxu0 }
 0x126   : > { %v4724_v50 = vpop.eup %4723  ;;  %v777_v52 = vadd.f32 %v5285_v43, %v776_v49  ;;  %4238 = vmatprep.mubr.bf16.mxu1 %v4722_v46 }
 0x127   : > { %v959_v53 = vpack.c.bf16 %v785_v48, %v782_v47  ;;  %4239 = vmatmul.mubr.bf16.gmra.mrb[12].mxu1 %v4724_v50 }
 0x128   : > { %v958_v54 = vpack.c.bf16 %v777_v52, %v774_v51 }
 0x12a   : > { %4729 = vtanh.bf16 %v958_v54  ;;  %v4172_v55 = vpop.f32.mrb[24].mxu0 }
 0x12b   : > { %4731 = vtanh.bf16 %v959_v53  ;;  %v789_v56 = vpop.f32.mrb[25].mxu0  ;;  %v798_v59 = vadd.f32 %v4172_v55, %v5285_v43 }
 0x12c   : > { %v4173_v57 = vpop.f32.mrb[26].mxu0  ;;  %v790_v63 = vadd.f32 %v5285_v43, %v789_v56 }
 0x12d   : > { %v4726_v58 = vpop.eup %4725  ;;  %v801_v60 = vadd.f32 %v4173_v57, %v5285_v43  ;;  %v792_v61 = vpop.f32.mrb[27].mxu0 }
 0x12e   : > { %v4728_v62 = vpop.eup %4727  ;;  %v793_v0 = vadd.f32 %v5285_v43, %v792_v61  ;;  %4242 = vmatprep.mubr.bf16.mxu1 %v4726_v58 }
 0x12f   : > { %v961_v1 = vpack.c.bf16 %v801_v60, %v798_v59  ;;  %4243 = vmatmul.mubr.bf16.gmra.mrb[16].mxu1 %v4728_v62 }
 0x130   : > { %v960_v2 = vpack.c.bf16 %v793_v0, %v790_v63 }
 0x132   : > { %4733 = vtanh.bf16 %v960_v2  ;;  %v4176_v3 = vpop.f32.mrb[28].mxu0 }
 0x133   : > { %4735 = vtanh.bf16 %v961_v1  ;;  %v805_v4 = vpop.f32.mrb[29].mxu0  ;;  %v814_v7 = vadd.f32 %v4176_v3, %v5285_v43 }
 0x134   : > { %v4177_v5 = vpop.f32.mrb[30].mxu0  ;;  %v806_v11 = vadd.f32 %v5285_v43, %v805_v4 }
 0x135   : > { %v4730_v6 = vpop.eup %4729  ;;  %v817_v8 = vadd.f32 %v4177_v5, %v5285_v43  ;;  %v808_v9 = vpop.f32.mrb[31].mxu0 }
 0x136   : > { %v4732_v10 = vpop.eup %4731  ;;  %v809_v12 = vadd.f32 %v5285_v43, %v808_v9  ;;  %4246 = vmatprep.mubr.bf16.mxu1 %v4730_v6 }
 0x137   : > { %v963_v13 = vpack.c.bf16 %v817_v8, %v814_v7  ;;  %4247 = vmatmul.mubr.bf16.gmra.mrb[20].mxu1 %v4732_v10 }
 0x138   : > { %v962_v14 = vpack.c.bf16 %v809_v12, %v806_v11 }
 0x13a   : > { %4737 = vtanh.bf16 %v962_v14  ;;  %v4180_v15 = vpop.f32.mrb[32].mxu0 }
 0x13b   : > { %4739 = vtanh.bf16 %v963_v13  ;;  %v821_v16 = vpop.f32.mrb[33].mxu0  ;;  %v830_v19 = vadd.f32 %v4180_v15, %v5285_v43 }
 0x13c   : > { %v4181_v17 = vpop.f32.mrb[34].mxu0  ;;  %v822_v23 = vadd.f32 %v5285_v43, %v821_v16 }
 0x13d   : > { %v4734_v18 = vpop.eup %4733  ;;  %v833_v20 = vadd.f32 %v4181_v17, %v5285_v43  ;;  %v824_v21 = vpop.f32.mrb[35].mxu0 }
 0x13e   : > { %v4736_v22 = vpop.eup %4735  ;;  %v825_v24 = vadd.f32 %v5285_v43, %v824_v21  ;;  %4250 = vmatprep.mubr.bf16.mxu1 %v4734_v18 }
 0x13f   : > { %v965_v25 = vpack.c.bf16 %v833_v20, %v830_v19  ;;  %4251 = vmatmul.mubr.bf16.gmra.mrb[24].mxu1 %v4736_v22 }
 0x140   : > { %v964_v26 = vpack.c.bf16 %v825_v24, %v822_v23 }
 0x142   : > { %4741 = vtanh.bf16 %v964_v26  ;;  %v4184_v27 = vpop.f32.mrb[36].mxu0 }
 0x143   : > { %4743 = vtanh.bf16 %v965_v25  ;;  %v837_v28 = vpop.f32.mrb[37].mxu0  ;;  %v846_v31 = vadd.f32 %v4184_v27, %v5285_v43  ;;  %v4684_v25 = vld [vmem:[%s6142_s5 + $0x38] sm:$0xff]  }
 0x144   : > { %v4185_v29 = vpop.f32.mrb[38].mxu0  ;;  %v838_v35 = vadd.f32 %v5285_v43, %v837_v28  ;;  %4304 = vmatprep.subr.bf16.mxu0 %v4684_v25 }
 0x145   : > { %v4738_v30 = vpop.eup %4737  ;;  %v849_v32 = vadd.f32 %v4185_v29, %v5285_v43  ;;  %v840_v33 = vpop.f32.mrb[39].mxu0  ;;  %4305 = vmatpush3.bf16.msra.mxu0 %v4684_v25 }
 0x146   : > { %v4740_v34 = vpop.eup %4739  ;;  %v841_v36 = vadd.f32 %v5285_v43, %v840_v33  ;;  %4254 = vmatprep.mubr.bf16.mxu1 %v4738_v30 }
 0x147   : > { %v967_v37 = vpack.c.bf16 %v849_v32, %v846_v31  ;;  %4255 = vmatmul.mubr.bf16.gmra.mrb[28].mxu1 %v4740_v34 }
 0x148   : > { %v966_v38 = vpack.c.bf16 %v841_v36, %v838_v35 }
 0x14a   : > { %4745 = vtanh.bf16 %v966_v38  ;;  %v4188_v39 = vpop.f32.mrb[40].mxu0 }
 0x14b   : > { %4747 = vtanh.bf16 %v967_v37  ;;  %v853_v40 = vpop.f32.mrb[41].mxu0  ;;  %v862_v44 = vadd.f32 %v4188_v39, %v5285_v43 }
 0x14c   : > { %v4189_v41 = vpop.f32.mrb[42].mxu0  ;;  %v854_v48 = vadd.f32 %v5285_v43, %v853_v40 }
 0x14d   : > { %v4742_v42 = vpop.eup %4741  ;;  %v865_v45 = vadd.f32 %v4189_v41, %v5285_v43  ;;  %v856_v46 = vpop.f32.mrb[43].mxu0 }
 0x14e   : > { %v4744_v47 = vpop.eup %4743  ;;  %v857_v49 = vadd.f32 %v5285_v43, %v856_v46  ;;  %4258 = vmatprep.mubr.bf16.mxu1 %v4742_v42 }
 0x14f   : > { %v969_v50 = vpack.c.bf16 %v865_v45, %v862_v44  ;;  %4259 = vmatmul.mubr.bf16.gmra.mrb[32].mxu1 %v4744_v47 }
 0x150   : > { %v968_v51 = vpack.c.bf16 %v857_v49, %v854_v48 }
 0x152   : > { %4749 = vtanh.bf16 %v968_v51  ;;  %v4192_v52 = vpop.f32.mrb[44].mxu0 }
 0x153   : > { %4751 = vtanh.bf16 %v969_v50  ;;  %v869_v53 = vpop.f32.mrb[45].mxu0  ;;  %v878_v56 = vadd.f32 %v4192_v52, %v5285_v43 }
 0x154   : > { %v4193_v54 = vpop.f32.mrb[46].mxu0  ;;  %v870_v60 = vadd.f32 %v5285_v43, %v869_v53 }
 0x155   : > { %v4746_v55 = vpop.eup %4745  ;;  %v881_v57 = vadd.f32 %v4193_v54, %v5285_v43  ;;  %v872_v58 = vpop.f32.mrb[47].mxu0  ;;  %v4685_v54 = vld [vmem:[%s6144_s7] sm:$0xff]  }
 0x156   : > { %v4748_v59 = vpop.eup %4747  ;;  %v873_v61 = vadd.f32 %v5285_v43, %v872_v58  ;;  %4262 = vmatprep.mubr.bf16.mxu1 %v4746_v55  ;;  %4370 = vmatprep.subr.bf16.mxu1 %v4685_v54  ;;  %v5381_v55 = vld [vmem:[%s6141_s4] ss:$0 sm:$0xff] }
 0x157   : > { %v971_v62 = vpack.c.bf16 %v881_v57, %v878_v56  ;;  %4263 = vmatmul.mubr.bf16.gmra.mrb[36].mxu1 %v4748_v59  ;;  %v4686_v56 = vld [vmem:[%s6144_s7 + $0x8] sm:$0xff]  }
 0x158   : > { %v970_v63 = vpack.c.bf16 %v873_v61, %v870_v60  ;;  %4371 = vmatpush3.bf16.msra.mxu1 %v4685_v54 }
 0x159   : > { %4372 = vmatprep.subr.bf16.mxu1 %v4686_v56 }
 0x15a   : > { %4753 = vtanh.bf16 %v970_v63  ;;  %v4196_v0 = vpop.f32.mrb[48].mxu0 }
 0x15b   : > { %4755 = vtanh.bf16 %v971_v62  ;;  %v885_v1 = vpop.f32.mrb[49].mxu0  ;;  %v894_v4 = vadd.f32 %v4196_v0, %v5285_v43 }
 0x15c   : > { %v4197_v2 = vpop.f32.mrb[50].mxu0  ;;  %v886_v8 = vadd.f32 %v5285_v43, %v885_v1  ;;  %4373 = vmatpush3.bf16.msra.mxu1 %v4686_v56 }
 0x15d   : > { %v4750_v3 = vpop.eup %4749  ;;  %v897_v5 = vadd.f32 %v4197_v2, %v5285_v43  ;;  %v888_v6 = vpop.f32.mrb[51].mxu0 }
 0x15e   : > { %v4752_v7 = vpop.eup %4751  ;;  %v889_v9 = vadd.f32 %v5285_v43, %v888_v6  ;;  %4266 = vmatprep.mubr.bf16.mxu1 %v4750_v3 }
 0x15f   : > { %v973_v10 = vpack.c.bf16 %v897_v5, %v894_v4  ;;  %4267 = vmatmul.mubr.bf16.gmra.mrb[40].mxu1 %v4752_v7 }
 0x160   : > { %v972_v11 = vpack.c.bf16 %v889_v9, %v886_v8 }
 0x162   : > { %4757 = vtanh.bf16 %v972_v11  ;;  %v4200_v12 = vpop.f32.mrb[52].mxu0  ;;  %v4687_v11 = vld [vmem:[%s6144_s7 + $0x10] sm:$0xff]  }
 0x163   : > { %4759 = vtanh.bf16 %v973_v10  ;;  %v901_v13 = vpop.f32.mrb[53].mxu0  ;;  %v910_v16 = vadd.f32 %v4200_v12, %v5285_v43  ;;  %v4688_v12 = vld [vmem:[%s6144_s7 + $0x18] sm:$0xff]   ;;  %4374 = vmatprep.subr.bf16.mxu1 %v4687_v11 }
 0x164   : > { %v4201_v14 = vpop.f32.mrb[54].mxu0  ;;  %v902_v20 = vadd.f32 %v5285_v43, %v901_v13  ;;  %4375 = vmatpush3.bf16.msra.mxu1 %v4687_v11 }
 0x165   : > { %v4754_v15 = vpop.eup %4753  ;;  %v913_v17 = vadd.f32 %v4201_v14, %v5285_v43  ;;  %v904_v18 = vpop.f32.mrb[55].mxu0  ;;  %4376 = vmatprep.subr.bf16.mxu1 %v4688_v12 }
 0x166   : > { %v4756_v19 = vpop.eup %4755  ;;  %v905_v21 = vadd.f32 %v5285_v43, %v904_v18  ;;  %4270 = vmatprep.mubr.bf16.mxu1 %v4754_v15 }
 0x167   : > { %v975_v22 = vpack.c.bf16 %v913_v17, %v910_v16  ;;  %4271 = vmatmul.mubr.bf16.gmra.mrb[44].mxu1 %v4756_v19  ;;  %v4689_v16 = vld [vmem:[%s6144_s7 + $0x20] sm:$0xff]  }
 0x168   : > { %v974_v23 = vpack.c.bf16 %v905_v21, %v902_v20  ;;  %4377 = vmatpush3.bf16.msra.mxu1 %v4688_v12 }
 0x169   : > { %4378 = vmatprep.subr.bf16.mxu1 %v4689_v16 }
 0x16a   : > { %4761 = vtanh.bf16 %v974_v23  ;;  %v4204_v24 = vpop.f32.mrb[56].mxu0 }
 0x16b   : > { %4763 = vtanh.bf16 %v975_v22  ;;  %v917_v26 = vpop.f32.mrb[57].mxu0  ;;  %v926_v29 = vadd.f32 %v4204_v24, %v5285_v43 }
 0x16c   : > { %v4205_v27 = vpop.f32.mrb[58].mxu0  ;;  %v918_v33 = vadd.f32 %v5285_v43, %v917_v26  ;;  %v4690_v26 = vld [vmem:[%s6144_s7 + $0x28] sm:$0xff]   ;;  %4379 = vmatpush3.bf16.msra.mxu1 %v4689_v16 }
 0x16d   : > { %v4758_v28 = vpop.eup %4757  ;;  %v929_v30 = vadd.f32 %v4205_v27, %v5285_v43  ;;  %v920_v31 = vpop.f32.mrb[59].mxu0  ;;  %4380 = vmatprep.subr.bf16.mxu1 %v4690_v26 }
 0x16e   : > { %v4760_v32 = vpop.eup %4759  ;;  %v921_v34 = vadd.f32 %v5285_v43, %v920_v31  ;;  %4274 = vmatprep.mubr.bf16.mxu1 %v4758_v28 }
 0x16f   : > { %v977_v35 = vpack.c.bf16 %v929_v30, %v926_v29  ;;  %4275 = vmatmul.mubr.bf16.gmra.mrb[48].mxu1 %v4760_v32  ;;  %v4691_v30 = vld [vmem:[%s6144_s7 + $0x30] sm:$0xff]  }
 0x170   : > { %v976_v36 = vpack.c.bf16 %v921_v34, %v918_v33  ;;  %4381 = vmatpush3.bf16.msra.mxu1 %v4690_v26 }
 0x171   : > { %4382 = vmatprep.subr.bf16.mxu1 %v4691_v30 }
 0x172   : > { %4765 = vtanh.bf16 %v976_v36  ;;  %v4208_v37 = vpop.f32.mrb[60].mxu0 }
 0x173   : > { %4767 = vtanh.bf16 %v977_v35  ;;  %v933_v38 = vpop.f32.mrb[61].mxu0  ;;  %v942_v41 = vadd.f32 %v4208_v37, %v5285_v43 }
 0x174   : > { %v4209_v39 = vpop.f32.mrb[62].mxu0  ;;  %v934_v46 = vadd.f32 %v5285_v43, %v933_v38  ;;  %4383 = vmatpush3.bf16.msra.mxu1 %v4691_v30 }
 0x175   : > { %v4762_v40 = vpop.eup %4761  ;;  %v945_v42 = vadd.f32 %v4209_v39, %v5285_v43  ;;  %v936_v44 = vpop.f32.mrb[63].mxu0 }
 0x176   : > { %v4764_v45 = vpop.eup %4763  ;;  %v937_v47 = vadd.f32 %v5285_v43, %v936_v44  ;;  %4278 = vmatprep.mubr.bf16.mxu1 %v4762_v40  ;;  %v4692_v40 = vld [vmem:[%s6144_s7 + $0x38] sm:$0xff]  }
 0x177   : > { %v979_v48 = vpack.c.bf16 %v945_v42, %v942_v41  ;;  %4279 = vmatmul.mubr.bf16.gmra.mrb[52].mxu1 %v4764_v45  ;;  %4384 = vmatprep.subr.bf16.mxu1 %v4692_v40 }
 0x178   : > { %v978_v49 = vpack.c.bf16 %v937_v47, %v934_v46  ;;  %4385 = vmatpush3.bf16.msra.mxu1 %v4692_v40 }
 0x17a   : > { %4769 = vtanh.bf16 %v978_v49 }
 0x17b   : > { %4771 = vtanh.bf16 %v979_v48 }
 0x17d   : > { %v4766_v50 = vpop.eup %4765 }
 0x17e   : > { %v4768_v51 = vpop.eup %4767  ;;  %4282 = vmatprep.mubr.bf16.mxu1 %v4766_v50 }
 0x17f   : > { %4283 = vmatmul.mubr.bf16.gmra.mrb[56].mxu1 %v4768_v51 }
 0x185   : > { %v4770_v52 = vpop.eup %4769 }
 0x186   : > { %v4772_v53 = vpop.eup %4771  ;;  %4286 = vmatprep.mubr.bf16.mxu1 %v4770_v52 }
 0x187   : > { %4287 = vmatmul.mubr.bf16.gmra.mrb[60].mxu1 %v4772_v53 }
 0x1e2   : > { %v4228_v43 = vpop.f32.mrb[0].mxu1 }
 0x1e3   : > { %v1117_v57 = vpop.f32.mrb[1].mxu1  ;;  %v1126_v59 = vadd.f32 %v4228_v43, %v5381_v55 }
 0x1e4   : > { %v4229_v58 = vpop.f32.mrb[2].mxu1  ;;  %v1118_v62 = vadd.f32 %v5381_v55, %v1117_v57 }
 0x1e5   : > { %v1129_v60 = vadd.f32 %v4229_v58, %v5381_v55  ;;  %v1120_v61 = vpop.f32.mrb[3].mxu1 }
 0x1e6   : > { %v1121_v63 = vadd.f32 %v5381_v55, %v1120_v61 }
 0x1e7   : > { %v1373_v0 = vpack.c.bf16 %v1129_v60, %v1126_v59 }
 0x1e8   : > { %v1372_v1 = vpack.c.bf16 %v1121_v63, %v1118_v62 }
 0x1ea   : > { %4773 = vtanh.bf16 %v1372_v1  ;;  %v4232_v2 = vpop.f32.mrb[4].mxu1 }
 0x1eb   : > { %4775 = vtanh.bf16 %v1373_v0  ;;  %v1133_v3 = vpop.f32.mrb[5].mxu1  ;;  %v1142_v5 = vadd.f32 %v4232_v2, %v5381_v55 }
 0x1ec   : > { %v4233_v4 = vpop.f32.mrb[6].mxu1  ;;  %v1134_v8 = vadd.f32 %v5381_v55, %v1133_v3 }
 0x1ed   : > { %v1145_v6 = vadd.f32 %v4233_v4, %v5381_v55  ;;  %v1136_v7 = vpop.f32.mrb[7].mxu1 }
 0x1ee   : > { %v1137_v9 = vadd.f32 %v5381_v55, %v1136_v7 }
 0x1ef   : > { %v1375_v10 = vpack.c.bf16 %v1145_v6, %v1142_v5 }
 0x1f0   : > { %v1374_v13 = vpack.c.bf16 %v1137_v9, %v1134_v8 }
 0x1f2   : > { %4777 = vtanh.bf16 %v1374_v13  ;;  %v4236_v14 = vpop.f32.mrb[8].mxu1 }
 0x1f3   : > { %4779 = vtanh.bf16 %v1375_v10  ;;  %v1149_v15 = vpop.f32.mrb[9].mxu1  ;;  %v1158_v19 = vadd.f32 %v4236_v14, %v5381_v55 }
 0x1f4   : > { %v4237_v17 = vpop.f32.mrb[10].mxu1  ;;  %v1150_v23 = vadd.f32 %v5381_v55, %v1149_v15 }
 0x1f5   : > { %v4774_v18 = vpop.eup %4773  ;;  %v1161_v20 = vadd.f32 %v4237_v17, %v5381_v55  ;;  %v1152_v21 = vpop.f32.mrb[11].mxu1 }
 0x1f6   : > { %v4776_v22 = vpop.eup %4775  ;;  %v1153_v24 = vadd.f32 %v5381_v55, %v1152_v21  ;;  %4306 = vmatprep.mubr.bf16.mxu0 %v4774_v18 }
 0x1f7   : > { %v1377_v25 = vpack.c.bf16 %v1161_v20, %v1158_v19  ;;  %4307 = vmatmul.mubr.bf16.vlgmr.msra.gmra.mrb[64].mxu0 %v4776_v22 }
 0x1f8   : > { %v1376_v27 = vpack.c.bf16 %v1153_v24, %v1150_v23 }
 0x1fa   : > { %4781 = vtanh.bf16 %v1376_v27  ;;  %v4240_v28 = vpop.f32.mrb[12].mxu1 }
 0x1fb   : > { %4783 = vtanh.bf16 %v1377_v25  ;;  %v1165_v29 = vpop.f32.mrb[13].mxu1  ;;  %v1174_v33 = vadd.f32 %v4240_v28, %v5381_v55 }
 0x1fc   : > { %v4241_v31 = vpop.f32.mrb[14].mxu1  ;;  %v1166_v37 = vadd.f32 %v5381_v55, %v1165_v29 }
 0x1fd   : > { %v4778_v32 = vpop.eup %4777  ;;  %v1177_v34 = vadd.f32 %v4241_v31, %v5381_v55  ;;  %v1168_v35 = vpop.f32.mrb[15].mxu1 }
 0x1fe   : > { %v4780_v36 = vpop.eup %4779  ;;  %v1169_v38 = vadd.f32 %v5381_v55, %v1168_v35  ;;  %4310 = vmatprep.mubr.bf16.mxu0 %v4778_v32 }
 0x1ff   : > { %v1379_v39 = vpack.c.bf16 %v1177_v34, %v1174_v33  ;;  %4311 = vmatmul.mubr.bf16.gmra.mrb[68].mxu0 %v4780_v36 }
 0x200   : > { %v1378_v41 = vpack.c.bf16 %v1169_v38, %v1166_v37 }
 0x202   : > { %4785 = vtanh.bf16 %v1378_v41  ;;  %v4244_v42 = vpop.f32.mrb[16].mxu1 }
 0x203   : > { %4787 = vtanh.bf16 %v1379_v39  ;;  %v1181_v44 = vpop.f32.mrb[17].mxu1  ;;  %v1190_v47 = vadd.f32 %v4244_v42, %v5381_v55 }
 0x204   : > { %v4245_v45 = vpop.f32.mrb[18].mxu1  ;;  %v1182_v51 = vadd.f32 %v5381_v55, %v1181_v44 }
 0x205   : > { %v4782_v46 = vpop.eup %4781  ;;  %v1193_v48 = vadd.f32 %v4245_v45, %v5381_v55  ;;  %v1184_v49 = vpop.f32.mrb[19].mxu1 }
 0x206   : > { %v4784_v50 = vpop.eup %4783  ;;  %v1185_v52 = vadd.f32 %v5381_v55, %v1184_v49  ;;  %4314 = vmatprep.mubr.bf16.mxu0 %v4782_v46 }
 0x207   : > { %v1381_v53 = vpack.c.bf16 %v1193_v48, %v1190_v47  ;;  %4315 = vmatmul.mubr.bf16.gmra.mrb[72].mxu0 %v4784_v50 }
 0x208   : > { %v1380_v54 = vpack.c.bf16 %v1185_v52, %v1182_v51 }
 0x20a   : > { %4789 = vtanh.bf16 %v1380_v54  ;;  %v4248_v43 = vpop.f32.mrb[20].mxu1 }
 0x20b   : > { %4791 = vtanh.bf16 %v1381_v53  ;;  %v1197_v56 = vpop.f32.mrb[21].mxu1  ;;  %v1206_v59 = vadd.f32 %v4248_v43, %v5381_v55 }
 0x20c   : > { %v4249_v57 = vpop.f32.mrb[22].mxu1  ;;  %v1198_v63 = vadd.f32 %v5381_v55, %v1197_v56 }
 0x20d   : > { %v4786_v58 = vpop.eup %4785  ;;  %v1209_v60 = vadd.f32 %v4249_v57, %v5381_v55  ;;  %v1200_v61 = vpop.f32.mrb[23].mxu1 }
 0x20e   : > { %v4788_v62 = vpop.eup %4787  ;;  %v1201_v0 = vadd.f32 %v5381_v55, %v1200_v61  ;;  %4318 = vmatprep.mubr.bf16.mxu0 %v4786_v58 }
 0x20f   : > { %v1383_v1 = vpack.c.bf16 %v1209_v60, %v1206_v59  ;;  %4319 = vmatmul.mubr.bf16.gmra.mrb[76].mxu0 %v4788_v62 }
 0x210   : > { %v1382_v2 = vpack.c.bf16 %v1201_v0, %v1198_v63 }
 0x212   : > { %4793 = vtanh.bf16 %v1382_v2  ;;  %v4252_v3 = vpop.f32.mrb[24].mxu1 }
 0x213   : > { %4795 = vtanh.bf16 %v1383_v1  ;;  %v1213_v4 = vpop.f32.mrb[25].mxu1  ;;  %v1222_v7 = vadd.f32 %v4252_v3, %v5381_v55 }
 0x214   : > { %v4253_v5 = vpop.f32.mrb[26].mxu1  ;;  %v1214_v11 = vadd.f32 %v5381_v55, %v1213_v4 }
 0x215   : > { %v4790_v6 = vpop.eup %4789  ;;  %v1225_v8 = vadd.f32 %v4253_v5, %v5381_v55  ;;  %v1216_v9 = vpop.f32.mrb[27].mxu1 }
 0x216   : > { %v4792_v10 = vpop.eup %4791  ;;  %v1217_v12 = vadd.f32 %v5381_v55, %v1216_v9  ;;  %4322 = vmatprep.mubr.bf16.mxu0 %v4790_v6 }
 0x217   : > { %v1385_v13 = vpack.c.bf16 %v1225_v8, %v1222_v7  ;;  %4323 = vmatmul.mubr.bf16.gmra.mrb[80].mxu0 %v4792_v10 }
 0x218   : > { %v1384_v14 = vpack.c.bf16 %v1217_v12, %v1214_v11 }
 0x21a   : > { %4797 = vtanh.bf16 %v1384_v14  ;;  %v4256_v15 = vpop.f32.mrb[28].mxu1 }
 0x21b   : > { %4799 = vtanh.bf16 %v1385_v13  ;;  %v1229_v16 = vpop.f32.mrb[29].mxu1  ;;  %v1238_v19 = vadd.f32 %v4256_v15, %v5381_v55 }
 0x21c   : > { %v4257_v17 = vpop.f32.mrb[30].mxu1  ;;  %v1230_v23 = vadd.f32 %v5381_v55, %v1229_v16 }
 0x21d   : > { %v4794_v18 = vpop.eup %4793  ;;  %v1241_v20 = vadd.f32 %v4257_v17, %v5381_v55  ;;  %v1232_v21 = vpop.f32.mrb[31].mxu1 }
 0x21e   : > { %v4796_v22 = vpop.eup %4795  ;;  %v1233_v24 = vadd.f32 %v5381_v55, %v1232_v21  ;;  %4326 = vmatprep.mubr.bf16.mxu0 %v4794_v18 }
 0x21f   : > { %v1387_v25 = vpack.c.bf16 %v1241_v20, %v1238_v19  ;;  %4327 = vmatmul.mubr.bf16.gmra.mrb[84].mxu0 %v4796_v22 }
 0x220   : > { %v1386_v26 = vpack.c.bf16 %v1233_v24, %v1230_v23 }
 0x222   : > { %4801 = vtanh.bf16 %v1386_v26  ;;  %v4260_v27 = vpop.f32.mrb[32].mxu1 }
 0x223   : > { %4803 = vtanh.bf16 %v1387_v25  ;;  %v1245_v28 = vpop.f32.mrb[33].mxu1  ;;  %v1254_v31 = vadd.f32 %v4260_v27, %v5381_v55 }
 0x224   : > { %v4261_v29 = vpop.f32.mrb[34].mxu1  ;;  %v1246_v35 = vadd.f32 %v5381_v55, %v1245_v28 }
 0x225   : > { %v4798_v30 = vpop.eup %4797  ;;  %v1257_v32 = vadd.f32 %v4261_v29, %v5381_v55  ;;  %v1248_v33 = vpop.f32.mrb[35].mxu1 }
 0x226   : > { %v4800_v34 = vpop.eup %4799  ;;  %v1249_v36 = vadd.f32 %v5381_v55, %v1248_v33  ;;  %4330 = vmatprep.mubr.bf16.mxu0 %v4798_v30 }
 0x227   : > { %v1389_v37 = vpack.c.bf16 %v1257_v32, %v1254_v31  ;;  %4331 = vmatmul.mubr.bf16.gmra.mrb[88].mxu0 %v4800_v34 }
 0x228   : > { %v1388_v38 = vpack.c.bf16 %v1249_v36, %v1246_v35 }
 0x22a   : > { %4805 = vtanh.bf16 %v1388_v38  ;;  %v4264_v39 = vpop.f32.mrb[36].mxu1 }
 0x22b   : > { %4807 = vtanh.bf16 %v1389_v37  ;;  %v1261_v40 = vpop.f32.mrb[37].mxu1  ;;  %v1270_v44 = vadd.f32 %v4264_v39, %v5381_v55 }
 0x22c   : > { %v4265_v41 = vpop.f32.mrb[38].mxu1  ;;  %v1262_v48 = vadd.f32 %v5381_v55, %v1261_v40 }
 0x22d   : > { %v4802_v42 = vpop.eup %4801  ;;  %v1273_v45 = vadd.f32 %v4265_v41, %v5381_v55  ;;  %v1264_v46 = vpop.f32.mrb[39].mxu1 }
 0x22e   : > { %v4804_v47 = vpop.eup %4803  ;;  %v1265_v49 = vadd.f32 %v5381_v55, %v1264_v46  ;;  %4334 = vmatprep.mubr.bf16.mxu0 %v4802_v42 }
 0x22f   : > { %v1391_v50 = vpack.c.bf16 %v1273_v45, %v1270_v44  ;;  %4335 = vmatmul.mubr.bf16.gmra.mrb[92].mxu0 %v4804_v47 }
 0x230   : > { %v1390_v51 = vpack.c.bf16 %v1265_v49, %v1262_v48 }
 0x232   : > { %4809 = vtanh.bf16 %v1390_v51  ;;  %v4268_v52 = vpop.f32.mrb[40].mxu1 }
 0x233   : > { %4811 = vtanh.bf16 %v1391_v50  ;;  %v1277_v53 = vpop.f32.mrb[41].mxu1  ;;  %v1286_v56 = vadd.f32 %v4268_v52, %v5381_v55 }
 0x234   : > { %v4269_v54 = vpop.f32.mrb[42].mxu1  ;;  %v1278_v60 = vadd.f32 %v5381_v55, %v1277_v53 }
 0x235   : > { %v4806_v43 = vpop.eup %4805  ;;  %v1289_v57 = vadd.f32 %v4269_v54, %v5381_v55  ;;  %v1280_v58 = vpop.f32.mrb[43].mxu1 }
 0x236   : > { %v4808_v59 = vpop.eup %4807  ;;  %v1281_v61 = vadd.f32 %v5381_v55, %v1280_v58  ;;  %4338 = vmatprep.mubr.bf16.mxu0 %v4806_v43 }
 0x237   : > { %v1393_v62 = vpack.c.bf16 %v1289_v57, %v1286_v56  ;;  %4339 = vmatmul.mubr.bf16.gmra.mrb[96].mxu0 %v4808_v59 }
 0x238   : > { %v1392_v63 = vpack.c.bf16 %v1281_v61, %v1278_v60 }
 0x23a   : > { %4813 = vtanh.bf16 %v1392_v63  ;;  %v4272_v0 = vpop.f32.mrb[44].mxu1 }
 0x23b   : > { %4815 = vtanh.bf16 %v1393_v62  ;;  %v1293_v1 = vpop.f32.mrb[45].mxu1  ;;  %v1302_v4 = vadd.f32 %v4272_v0, %v5381_v55 }
 0x23c   : > { %v4273_v2 = vpop.f32.mrb[46].mxu1  ;;  %v1294_v8 = vadd.f32 %v5381_v55, %v1293_v1  ;;  %v4693_v1 = vld [vmem:[%s6146_s9] sm:$0xff]  }
 0x23d   : > { %v4810_v3 = vpop.eup %4809  ;;  %v1305_v5 = vadd.f32 %v4273_v2, %v5381_v55  ;;  %v1296_v6 = vpop.f32.mrb[47].mxu1  ;;  %4450 = vmatprep.subr.bf16.mxu0 %v4693_v1  ;;  %v4694_v2 = vld [vmem:[%s6146_s9 + $0x8] sm:$0xff]  }
 0x23e   : > { %v4812_v7 = vpop.eup %4811  ;;  %v1297_v9 = vadd.f32 %v5381_v55, %v1296_v6  ;;  %4342 = vmatprep.mubr.bf16.mxu0 %v4810_v3  ;;  %4451 = vmatpush3.bf16.msra.mxu0 %v4693_v1  ;;  %v5477_v3 = vld [vmem:[%s6143_s6] ss:$0 sm:$0xff] }
 0x23f   : > { %v1395_v10 = vpack.c.bf16 %v1305_v5, %v1302_v4  ;;  %4343 = vmatmul.mubr.bf16.gmra.mrb[100].mxu0 %v4812_v7  ;;  %v4695_v5 = vld [vmem:[%s6146_s9 + $0x10] sm:$0xff]   ;;  %4452 = vmatprep.subr.bf16.mxu0 %v4694_v2 }
 0x240   : > { %v1394_v11 = vpack.c.bf16 %v1297_v9, %v1294_v8 }
 0x242   : > { %4817 = vtanh.bf16 %v1394_v11  ;;  %v4276_v12 = vpop.f32.mrb[48].mxu1  ;;  %4453 = vmatpush3.bf16.msra.mxu0 %v4694_v2  ;;  %v4696_v11 = vld [vmem:[%s6146_s9 + $0x18] sm:$0xff]  }
 0x243   : > { %4819 = vtanh.bf16 %v1395_v10  ;;  %v1309_v13 = vpop.f32.mrb[49].mxu1  ;;  %v1318_v16 = vadd.f32 %v4276_v12, %v5381_v55  ;;  %4454 = vmatprep.subr.bf16.mxu0 %v4695_v5 }
 0x244   : > { %v4277_v14 = vpop.f32.mrb[50].mxu1  ;;  %v1310_v20 = vadd.f32 %v5381_v55, %v1309_v13 }
 0x245   : > { %v4814_v15 = vpop.eup %4813  ;;  %v1321_v17 = vadd.f32 %v4277_v14, %v5381_v55  ;;  %v1312_v18 = vpop.f32.mrb[51].mxu1 }
 0x246   : > { %v4816_v19 = vpop.eup %4815  ;;  %v1313_v21 = vadd.f32 %v5381_v55, %v1312_v18  ;;  %4346 = vmatprep.mubr.bf16.mxu0 %v4814_v15  ;;  %4455 = vmatpush3.bf16.msra.mxu0 %v4695_v5 }
 0x247   : > { %v1397_v22 = vpack.c.bf16 %v1321_v17, %v1318_v16  ;;  %4347 = vmatmul.mubr.bf16.gmra.mrb[104].mxu0 %v4816_v19  ;;  %4456 = vmatprep.subr.bf16.mxu0 %v4696_v11  ;;  %v4697_v16 = vld [vmem:[%s6146_s9 + $0x20] sm:$0xff]  }
 0x248   : > { %v1396_v23 = vpack.c.bf16 %v1313_v21, %v1310_v20 }
 0x24a   : > { %4821 = vtanh.bf16 %v1396_v23  ;;  %v4280_v24 = vpop.f32.mrb[52].mxu1  ;;  %4457 = vmatpush3.bf16.msra.mxu0 %v4696_v11  ;;  %v4698_v23 = vld [vmem:[%s6146_s9 + $0x28] sm:$0xff]  }
 0x24b   : > { %4823 = vtanh.bf16 %v1397_v22  ;;  %v1325_v25 = vpop.f32.mrb[53].mxu1  ;;  %v1334_v28 = vadd.f32 %v4280_v24, %v5381_v55  ;;  %4458 = vmatprep.subr.bf16.mxu0 %v4697_v16 }
 0x24c   : > { %v4281_v26 = vpop.f32.mrb[54].mxu1  ;;  %v1326_v32 = vadd.f32 %v5381_v55, %v1325_v25 }
 0x24d   : > { %v4818_v27 = vpop.eup %4817  ;;  %v1337_v29 = vadd.f32 %v4281_v26, %v5381_v55  ;;  %v1328_v30 = vpop.f32.mrb[55].mxu1 }
 0x24e   : > { %v4820_v31 = vpop.eup %4819  ;;  %v1329_v33 = vadd.f32 %v5381_v55, %v1328_v30  ;;  %4350 = vmatprep.mubr.bf16.mxu0 %v4818_v27  ;;  %4459 = vmatpush3.bf16.msra.mxu0 %v4697_v16 }
 0x24f   : > { %v1399_v34 = vpack.c.bf16 %v1337_v29, %v1334_v28  ;;  %4351 = vmatmul.mubr.bf16.gmra.mrb[108].mxu0 %v4820_v31  ;;  %4460 = vmatprep.subr.bf16.mxu0 %v4698_v23  ;;  %v4699_v28 = vld [vmem:[%s6146_s9 + $0x30] sm:$0xff]  }
 0x250   : > { %v1398_v35 = vpack.c.bf16 %v1329_v33, %v1326_v32 }
 0x252   : > { %4825 = vtanh.bf16 %v1398_v35  ;;  %v4284_v36 = vpop.f32.mrb[56].mxu1  ;;  %4461 = vmatpush3.bf16.msra.mxu0 %v4698_v23 }
 0x253   : > { %4827 = vtanh.bf16 %v1399_v34  ;;  %v1341_v37 = vpop.f32.mrb[57].mxu1  ;;  %v1350_v40 = vadd.f32 %v4284_v36, %v5381_v55  ;;  %4462 = vmatprep.subr.bf16.mxu0 %v4699_v28 }
 0x254   : > { %v4285_v38 = vpop.f32.mrb[58].mxu1  ;;  %v1342_v45 = vadd.f32 %v5381_v55, %v1341_v37 }
 0x255   : > { %v4822_v39 = vpop.eup %4821  ;;  %v1353_v41 = vadd.f32 %v4285_v38, %v5381_v55  ;;  %v1344_v42 = vpop.f32.mrb[59].mxu1 }
 0x256   : > { %v4824_v44 = vpop.eup %4823  ;;  %v1345_v46 = vadd.f32 %v5381_v55, %v1344_v42  ;;  %4354 = vmatprep.mubr.bf16.mxu0 %v4822_v39  ;;  %4463 = vmatpush3.bf16.msra.mxu0 %v4699_v28 }
 0x257   : > { %v1401_v47 = vpack.c.bf16 %v1353_v41, %v1350_v40  ;;  %4355 = vmatmul.mubr.bf16.gmra.mrb[112].mxu0 %v4824_v44 }
 0x258   : > { %v1400_v48 = vpack.c.bf16 %v1345_v46, %v1342_v45 }
 0x25a   : > { %4829 = vtanh.bf16 %v1400_v48  ;;  %v4288_v49 = vpop.f32.mrb[60].mxu1 }
 0x25b   : > { %4831 = vtanh.bf16 %v1401_v47  ;;  %v1357_v50 = vpop.f32.mrb[61].mxu1  ;;  %v1366_v53 = vadd.f32 %v4288_v49, %v5381_v55 }
 0x25c   : > { %v4289_v51 = vpop.f32.mrb[62].mxu1  ;;  %v1358_v57 = vadd.f32 %v5381_v55, %v1357_v50 }
 0x25d   : > { %v4826_v52 = vpop.eup %4825  ;;  %v1369_v54 = vadd.f32 %v4289_v51, %v5381_v55  ;;  %v1360_v43 = vpop.f32.mrb[63].mxu1 }
 0x25e   : > { %v4828_v56 = vpop.eup %4827  ;;  %v1361_v58 = vadd.f32 %v5381_v55, %v1360_v43  ;;  %4358 = vmatprep.mubr.bf16.mxu0 %v4826_v52 }
 0x25f   : > { %v1403_v59 = vpack.c.bf16 %v1369_v54, %v1366_v53  ;;  %4359 = vmatmul.mubr.bf16.gmra.mrb[116].mxu0 %v4828_v56 }
 0x260   : > { %v1402_v60 = vpack.c.bf16 %v1361_v58, %v1358_v57 }
 0x262   : > { %4833 = vtanh.bf16 %v1402_v60 }
 0x263   : > { %4835 = vtanh.bf16 %v1403_v59 }
 0x265   : > { %v4830_v61 = vpop.eup %4829 }
 0x266   : > { %v4832_v62 = vpop.eup %4831  ;;  %4362 = vmatprep.mubr.bf16.mxu0 %v4830_v61 }
 0x267   : > { %4363 = vmatmul.mubr.bf16.gmra.mrb[120].mxu0 %v4832_v62 }
 0x26d   : > { %v4834_v63 = vpop.eup %4833 }
 0x26e   : > { %v4836_v0 = vpop.eup %4835  ;;  %4366 = vmatprep.mubr.bf16.mxu0 %v4834_v63 }
 0x26f   : > { %4367 = vmatmul.mubr.bf16.gmra.mrb[124].mxu0 %v4836_v0 }
 0x2ca   : > { %v4308_v55 = vpop.f32.mrb[64].mxu0 }
 0x2cb   : > { %v1541_v4 = vpop.f32.mrb[65].mxu0  ;;  %v5495_v12 = vadd.f32 %v4308_v55, %v5477_v3 }
 0x2cc   : > { %v4309_v6 = vpop.f32.mrb[66].mxu0  ;;  %v5486_v9 = vadd.f32 %v5477_v3, %v1541_v4 }
 0x2cd   : > { %v5483_v7 = vadd.f32 %v4309_v6, %v5477_v3  ;;  %v1544_v8 = vpop.f32.mrb[67].mxu0 }
 0x2ce   : > { %v5489_v10 = vadd.f32 %v5477_v3, %v1544_v8 }
 0x2cf   : > { %v1797_v14 = vpack.c.bf16 %v5483_v7, %v5495_v12 }
 0x2d0   : > { %v1796_v13 = vpack.c.bf16 %v5489_v10, %v5486_v9 }
 0x2d2   : > { %v4312_v15 = vpop.f32.mrb[68].mxu0  ;;  %4386 = vmatprep.mubr.bf16.mxu1 %v1796_v13 }
 0x2d3   : > { %v1557_v17 = vpop.f32.mrb[69].mxu0  ;;  %4387 = vmatmul.mubr.bf16.vlgmr.msra.gmra.mrb[64].mxu1 %v1797_v14  ;;  %v5517_v24 = vadd.f32 %v4312_v15, %v5477_v3 }
 0x2d4   : > { %v4313_v18 = vpop.f32.mrb[70].mxu0  ;;  %v5508_v21 = vadd.f32 %v5477_v3, %v1557_v17 }
 0x2d5   : > { %v5505_v19 = vadd.f32 %v4313_v18, %v5477_v3  ;;  %v1560_v20 = vpop.f32.mrb[71].mxu0 }
 0x2d6   : > { %v5511_v22 = vadd.f32 %v5477_v3, %v1560_v20 }
 0x2d7   : > { %v1799_v26 = vpack.c.bf16 %v5505_v19, %v5517_v24 }
 0x2d8   : > { %v1798_v25 = vpack.c.bf16 %v5511_v22, %v5508_v21 }
 0x2da   : > { %v4316_v27 = vpop.f32.mrb[72].mxu0  ;;  %4390 = vmatprep.mubr.bf16.mxu1 %v1798_v25 }
 0x2db   : > { %v1573_v29 = vpop.f32.mrb[73].mxu0  ;;  %4391 = vmatmul.mubr.bf16.gmra.mrb[68].mxu1 %v1799_v26  ;;  %v5536_v35 = vadd.f32 %v4316_v27, %v5477_v3 }
 0x2dc   : > { %v4317_v30 = vpop.f32.mrb[74].mxu0  ;;  %v5530_v33 = vadd.f32 %v5477_v3, %v1573_v29 }
 0x2dd   : > { %v5527_v31 = vadd.f32 %v4317_v30, %v5477_v3  ;;  %v1576_v32 = vpop.f32.mrb[75].mxu0 }
 0x2de   : > { %v5533_v34 = vadd.f32 %v5477_v3, %v1576_v32 }
 0x2df   : > { %v1801_v37 = vpack.c.bf16 %v5527_v31, %v5536_v35 }
 0x2e0   : > { %v1800_v36 = vpack.c.bf16 %v5533_v34, %v5530_v33 }
 0x2e2   : > { %v4320_v38 = vpop.f32.mrb[76].mxu0  ;;  %4394 = vmatprep.mubr.bf16.mxu1 %v1800_v36 }
 0x2e3   : > { %v1589_v39 = vpop.f32.mrb[77].mxu0  ;;  %4395 = vmatmul.mubr.bf16.gmra.mrb[72].mxu1 %v1801_v37  ;;  %v5552_v46 = vadd.f32 %v4320_v38, %v5477_v3 }
 0x2e4   : > { %v4321_v40 = vpop.f32.mrb[78].mxu0  ;;  %v5546_v44 = vadd.f32 %v5477_v3, %v1589_v39 }
 0x2e5   : > { %v5543_v41 = vadd.f32 %v4321_v40, %v5477_v3  ;;  %v1592_v42 = vpop.f32.mrb[79].mxu0 }
 0x2e6   : > { %v5549_v45 = vadd.f32 %v5477_v3, %v1592_v42 }
 0x2e7   : > { %v1803_v48 = vpack.c.bf16 %v5543_v41, %v5552_v46 }
 0x2e8   : > { %v1802_v47 = vpack.c.bf16 %v5549_v45, %v5546_v44 }
 0x2ea   : > { %v4324_v49 = vpop.f32.mrb[80].mxu0  ;;  %4398 = vmatprep.mubr.bf16.mxu1 %v1802_v47 }
 0x2eb   : > { %v1605_v50 = vpop.f32.mrb[81].mxu0  ;;  %4399 = vmatmul.mubr.bf16.gmra.mrb[76].mxu1 %v1803_v48  ;;  %v5568_v56 = vadd.f32 %v4324_v49, %v5477_v3 }
 0x2ec   : > { %v4325_v51 = vpop.f32.mrb[82].mxu0  ;;  %v5562_v54 = vadd.f32 %v5477_v3, %v1605_v50 }
 0x2ed   : > { %v5559_v52 = vadd.f32 %v4325_v51, %v5477_v3  ;;  %v1608_v53 = vpop.f32.mrb[83].mxu0 }
 0x2ee   : > { %v5565_v43 = vadd.f32 %v5477_v3, %v1608_v53 }
 0x2ef   : > { %v1805_v58 = vpack.c.bf16 %v5559_v52, %v5568_v56 }
 0x2f0   : > { %v1804_v57 = vpack.c.bf16 %v5565_v43, %v5562_v54 }
 0x2f2   : > { %v4328_v59 = vpop.f32.mrb[84].mxu0  ;;  %4402 = vmatprep.mubr.bf16.mxu1 %v1804_v57 }
 0x2f3   : > { %v1621_v60 = vpop.f32.mrb[85].mxu0  ;;  %4403 = vmatmul.mubr.bf16.gmra.mrb[80].mxu1 %v1805_v58  ;;  %v5584_v55 = vadd.f32 %v4328_v59, %v5477_v3 }
 0x2f4   : > { %v4329_v61 = vpop.f32.mrb[86].mxu0  ;;  %v5578_v0 = vadd.f32 %v5477_v3, %v1621_v60 }
 0x2f5   : > { %v5575_v62 = vadd.f32 %v4329_v61, %v5477_v3  ;;  %v1624_v63 = vpop.f32.mrb[87].mxu0 }
 0x2f6   : > { %v5581_v1 = vadd.f32 %v5477_v3, %v1624_v63 }
 0x2f7   : > { %v1807_v4 = vpack.c.bf16 %v5575_v62, %v5584_v55 }
 0x2f8   : > { %v1806_v2 = vpack.c.bf16 %v5581_v1, %v5578_v0 }
 0x2fa   : > { %v4332_v5 = vpop.f32.mrb[88].mxu0  ;;  %4406 = vmatprep.mubr.bf16.mxu1 %v1806_v2 }
 0x2fb   : > { %v1637_v6 = vpop.f32.mrb[89].mxu0  ;;  %4407 = vmatmul.mubr.bf16.gmra.mrb[84].mxu1 %v1807_v4  ;;  %v5600_v16 = vadd.f32 %v4332_v5, %v5477_v3 }
 0x2fc   : > { %v4333_v8 = vpop.f32.mrb[90].mxu0  ;;  %v5594_v14 = vadd.f32 %v5477_v3, %v1637_v6 }
 0x2fd   : > { %v5591_v11 = vadd.f32 %v4333_v8, %v5477_v3  ;;  %v1640_v13 = vpop.f32.mrb[91].mxu0 }
 0x2fe   : > { %v5597_v15 = vadd.f32 %v5477_v3, %v1640_v13 }
 0x2ff   : > { %v1809_v18 = vpack.c.bf16 %v5591_v11, %v5600_v16 }
 0x300   : > { %v1808_v17 = vpack.c.bf16 %v5597_v15, %v5594_v14 }
 0x302   : > { %v4336_v20 = vpop.f32.mrb[92].mxu0  ;;  %4410 = vmatprep.mubr.bf16.mxu1 %v1808_v17 }
 0x303   : > { %v1653_v23 = vpop.f32.mrb[93].mxu0  ;;  %4411 = vmatmul.mubr.bf16.gmra.mrb[88].mxu1 %v1809_v18  ;;  %v5616_v30 = vadd.f32 %v4336_v20, %v5477_v3 }
 0x304   : > { %v4337_v25 = vpop.f32.mrb[94].mxu0  ;;  %v5610_v28 = vadd.f32 %v5477_v3, %v1653_v23 }
 0x305   : > { %v5607_v26 = vadd.f32 %v4337_v25, %v5477_v3  ;;  %v1656_v27 = vpop.f32.mrb[95].mxu0 }
 0x306   : > { %v5613_v29 = vadd.f32 %v5477_v3, %v1656_v27 }
 0x307   : > { %v1811_v36 = vpack.c.bf16 %v5607_v26, %v5616_v30 }
 0x308   : > { %v1810_v32 = vpack.c.bf16 %v5613_v29, %v5610_v28 }
 0x30a   : > { %v4340_v37 = vpop.f32.mrb[96].mxu0  ;;  %4414 = vmatprep.mubr.bf16.mxu1 %v1810_v32 }
 0x30b   : > { %v1669_v38 = vpop.f32.mrb[97].mxu0  ;;  %4415 = vmatmul.mubr.bf16.gmra.mrb[92].mxu1 %v1811_v36  ;;  %v5632_v49 = vadd.f32 %v4340_v37, %v5477_v3 }
 0x30c   : > { %v4341_v39 = vpop.f32.mrb[98].mxu0  ;;  %v5626_v47 = vadd.f32 %v5477_v3, %v1669_v38 }
 0x30d   : > { %v5623_v40 = vadd.f32 %v4341_v39, %v5477_v3  ;;  %v1672_v42 = vpop.f32.mrb[99].mxu0 }
 0x30e   : > { %v5629_v48 = vadd.f32 %v5477_v3, %v1672_v42 }
 0x30f   : > { %v1813_v51 = vpack.c.bf16 %v5623_v40, %v5632_v49 }
 0x310   : > { %v1812_v50 = vpack.c.bf16 %v5629_v48, %v5626_v47 }
 0x312   : > { %v4344_v53 = vpop.f32.mrb[100].mxu0  ;;  %4418 = vmatprep.mubr.bf16.mxu1 %v1812_v50 }
 0x313   : > { %v1685_v57 = vpop.f32.mrb[101].mxu0  ;;  %4419 = vmatmul.mubr.bf16.gmra.mrb[96].mxu1 %v1813_v51  ;;  %v5648_v2 = vadd.f32 %v4344_v53, %v5477_v3 }
 0x314   : > { %v4345_v58 = vpop.f32.mrb[102].mxu0  ;;  %v5642_v61 = vadd.f32 %v5477_v3, %v1685_v57 }
 0x315   : > { %v5639_v59 = vadd.f32 %v4345_v58, %v5477_v3  ;;  %v1688_v60 = vpop.f32.mrb[103].mxu0 }
 0x316   : > { %v5645_v63 = vadd.f32 %v5477_v3, %v1688_v60 }
 0x317   : > { %v1815_v5 = vpack.c.bf16 %v5639_v59, %v5648_v2 }
 0x318   : > { %v1814_v4 = vpack.c.bf16 %v5645_v63, %v5642_v61 }
 0x31a   : > { %v4348_v6 = vpop.f32.mrb[104].mxu0  ;;  %4422 = vmatprep.mubr.bf16.mxu1 %v1814_v4 }
 0x31b   : > { %v1701_v8 = vpop.f32.mrb[105].mxu0  ;;  %4423 = vmatmul.mubr.bf16.gmra.mrb[100].mxu1 %v1815_v5  ;;  %v5664_v25 = vadd.f32 %v4348_v6, %v5477_v3 }
 0x31c   : > { %v4349_v13 = vpop.f32.mrb[106].mxu0  ;;  %v5658_v20 = vadd.f32 %v5477_v3, %v1701_v8 }
 0x31d   : > { %v5655_v17 = vadd.f32 %v4349_v13, %v5477_v3  ;;  %v1704_v18 = vpop.f32.mrb[107].mxu0 }
 0x31e   : > { %v5661_v23 = vadd.f32 %v5477_v3, %v1704_v18 }
 0x31f   : > { %v1817_v32 = vpack.c.bf16 %v5655_v17, %v5664_v25 }
 0x320   : > { %v1816_v27 = vpack.c.bf16 %v5661_v23, %v5658_v20 }
 0x322   : > { %v4352_v36 = vpop.f32.mrb[108].mxu0  ;;  %4426 = vmatprep.mubr.bf16.mxu1 %v1816_v27  ;;  %v4700_v27 = vld [vmem:[%s6146_s9 + $0x38] sm:$0xff]  }
 0x323   : > { %v1717_v37 = vpop.f32.mrb[109].mxu0  ;;  %4427 = vmatmul.mubr.bf16.gmra.mrb[104].mxu1 %v1817_v32  ;;  %v5680_v53 = vadd.f32 %v4352_v36, %v5477_v3  ;;  %4464 = vmatprep.subr.bf16.mxu0 %v4700_v27 }
 0x324   : > { %v4353_v38 = vpop.f32.mrb[110].mxu0  ;;  %v5674_v50 = vadd.f32 %v5477_v3, %v1717_v37  ;;  %4465 = vmatpush3.bf16.msra.mxu0 %v4700_v27 }
 0x325   : > { %v5671_v39 = vadd.f32 %v4353_v38, %v5477_v3  ;;  %v1720_v42 = vpop.f32.mrb[111].mxu0  ;;  %6181 = vst [vmem:[#allocation10_spill] sm:$0xff] %v5680_v53 }
 0x326   : > { %6179 = vst [vmem:[#allocation8_spill] sm:$0xff] %v5674_v50  ;;  %v5677_v51 = vadd.f32 %v5477_v3, %v1720_v42 }
 0x327   : > { %6178 = vst [vmem:[#allocation7_spill] sm:$0xff] %v5671_v39  ;;  %v1819_v58 = vpack.c.bf16 %v5671_v39, %v5680_v53 }
 0x328   : > { %6180 = vst [vmem:[#allocation9_spill] sm:$0xff] %v5677_v51  ;;  %v1818_v57 = vpack.c.bf16 %v5677_v51, %v5674_v50 }
 0x32a   : > { %v4356_v60 = vpop.f32.mrb[112].mxu0  ;;  %4430 = vmatprep.mubr.bf16.mxu1 %v1818_v57 }
 0x32b   : > { %v1733_v4 = vpop.f32.mrb[113].mxu0  ;;  %4431 = vmatmul.mubr.bf16.gmra.mrb[108].mxu1 %v1819_v58  ;;  %v5699_v32 = vadd.f32 %v4356_v60, %v5477_v3 }
 0x32c   : > { %v4357_v5 = vpop.f32.mrb[114].mxu0  ;;  %v5690_v13 = vadd.f32 %v5477_v3, %v1733_v4 }
 0x32d   : > { %v5687_v6 = vadd.f32 %v4357_v5, %v5477_v3  ;;  %v1736_v8 = vpop.f32.mrb[115].mxu0  ;;  %6185 = vst [vmem:[#allocation14_spill] sm:$0xff] %v5699_v32 }
 0x32e   : > { %6183 = vst [vmem:[#allocation12_spill] sm:$0xff] %v5690_v13  ;;  %v5693_v18 = vadd.f32 %v5477_v3, %v1736_v8 }
 0x32f   : > { %6182 = vst [vmem:[#allocation11_spill] sm:$0xff] %v5687_v6  ;;  %v1821_v37 = vpack.c.bf16 %v5687_v6, %v5699_v32 }
 0x330   : > { %6184 = vst [vmem:[#allocation13_spill] sm:$0xff] %v5693_v18  ;;  %v1820_v36 = vpack.c.bf16 %v5693_v18, %v5690_v13 }
 0x332   : > { %v4360_v38 = vpop.f32.mrb[116].mxu0  ;;  %4434 = vmatprep.mubr.bf16.mxu1 %v1820_v36 }
 0x333   : > { %v1749_v42 = vpop.f32.mrb[117].mxu0  ;;  %4435 = vmatmul.mubr.bf16.gmra.mrb[112].mxu1 %v1821_v37  ;;  %v5715_v8 = vadd.f32 %v4360_v38, %v5477_v3 }
 0x334   : > { %v4361_v57 = vpop.f32.mrb[118].mxu0  ;;  %v5709_v60 = vadd.f32 %v5477_v3, %v1749_v42 }
 0x335   : > { %v5706_v58 = vadd.f32 %v4361_v57, %v5477_v3  ;;  %v1752_v4 = vpop.f32.mrb[119].mxu0  ;;  %6189 = vst [vmem:[#allocation18_spill] sm:$0xff] %v5715_v8 }
 0x336   : > { %6187 = vst [vmem:[#allocation16_spill] sm:$0xff] %v5709_v60  ;;  %v5712_v5 = vadd.f32 %v5477_v3, %v1752_v4 }
 0x337   : > { %6186 = vst [vmem:[#allocation15_spill] sm:$0xff] %v5706_v58  ;;  %v1823_v36 = vpack.c.bf16 %v5706_v58, %v5715_v8 }
 0x338   : > { %6188 = vst [vmem:[#allocation17_spill] sm:$0xff] %v5712_v5  ;;  %v1822_v27 = vpack.c.bf16 %v5712_v5, %v5709_v60 }
 0x33a   : > { %v4364_v37 = vpop.f32.mrb[120].mxu0  ;;  %4438 = vmatprep.mubr.bf16.mxu1 %v1822_v27 }
 0x33b   : > { %v1765_v57 = vpop.f32.mrb[121].mxu0  ;;  %4439 = vmatmul.mubr.bf16.gmra.mrb[116].mxu1 %v1823_v36  ;;  %v5731_v5 = vadd.f32 %v4364_v37, %v5477_v3 }
 0x33c   : > { %v4365_v18 = vpop.f32.mrb[122].mxu0  ;;  %v5725_v4 = vadd.f32 %v5477_v3, %v1765_v57 }
 0x33d   : > { %v5722_v42 = vadd.f32 %v4365_v18, %v5477_v3  ;;  %v1768_v13 = vpop.f32.mrb[123].mxu0  ;;  %6193 = vst [vmem:[#allocation22_spill] sm:$0xff] %v5731_v5 }
 0x33e   : > { %6191 = vst [vmem:[#allocation20_spill] sm:$0xff] %v5725_v4  ;;  %v5728_v38 = vadd.f32 %v5477_v3, %v1768_v13 }
 0x33f   : > { %6190 = vst [vmem:[#allocation19_spill] sm:$0xff] %v5722_v42  ;;  %v1825_v27 = vpack.c.bf16 %v5722_v42, %v5731_v5 }
 0x340   : > { %6192 = vst [vmem:[#allocation21_spill] sm:$0xff] %v5728_v38  ;;  %v1824_v60 = vpack.c.bf16 %v5728_v38, %v5725_v4 }
 0x342   : > { %v4368_v36 = vpop.f32.mrb[124].mxu0  ;;  %4442 = vmatprep.mubr.bf16.mxu1 %v1824_v60 }
 0x343   : > { %v1781_v18 = vpop.f32.mrb[125].mxu0  ;;  %4443 = vmatmul.mubr.bf16.gmra.mrb[120].mxu1 %v1825_v27  ;;  %v5747_v38 = vadd.f32 %v4368_v36, %v5477_v3  ;;  %v5756_v27 = vld [vmem:[%s6145_s8] ss:$0 sm:$0xff] }
 0x344   : > { %v4369_v58 = vpop.f32.mrb[126].mxu0  ;;  %v5741_v13 = vadd.f32 %v5477_v3, %v1781_v18 }
 0x345   : > { %v5738_v57 = vadd.f32 %v4369_v58, %v5477_v3  ;;  %v1784_v8 = vpop.f32.mrb[127].mxu0  ;;  %6197 = vst [vmem:[#allocation26_spill] sm:$0xff] %v5747_v38 }
 0x346   : > { %6195 = vst [vmem:[#allocation24_spill] sm:$0xff] %v5741_v13  ;;  %v5744_v37 = vadd.f32 %v5477_v3, %v1784_v8 }
 0x347   : > { %6194 = vst [vmem:[#allocation23_spill] sm:$0xff] %v5738_v57  ;;  %v1827_v60 = vpack.c.bf16 %v5738_v57, %v5747_v38 }
 0x348   : > { %6196 = vst [vmem:[#allocation25_spill] sm:$0xff] %v5744_v37  ;;  %v1826_v4 = vpack.c.bf16 %v5744_v37, %v5741_v13 }
 0x34a   : > { %4446 = vmatprep.mubr.bf16.mxu1 %v1826_v4  ;;  %v4701_v4 = vld [vmem:[%s6148_s11] sm:$0xff]  }
 0x34b   : > { %4447 = vmatmul.mubr.bf16.gmra.mrb[124].mxu1 %v1827_v60  ;;  %4610 = vmatprep.subr.bf16.mxu1 %v4701_v4 }
 0x34c   : > { %4530 = vmatprep.subr.bf16.mxu0 %v4701_v4  ;;  %4618 = vmatpush3.bf16.msra.mxu1 %v4701_v4 }
 0x3a6   : > { %v4388_v58 = vpop.f32.mrb[64].mxu1 }
 0x3a7   : > { %v1933_v18 = vpop.f32.mrb[65].mxu1  ;;  %v1942_v42 = vadd.f32 %v4388_v58, %v5756_v27 }
 0x3a8   : > { %v4389_v8 = vpop.f32.mrb[66].mxu1  ;;  %v1934_v37 = vadd.f32 %v5756_v27, %v1933_v18 }
 0x3a9   : > { %v1945_v3 = vadd.f32 %v4389_v8, %v5756_v27  ;;  %v1936_v36 = vpop.f32.mrb[67].mxu1 }
 0x3aa   : > { %v1937_v13 = vadd.f32 %v5756_v27, %v1936_v36 }
 0x3ab   : > { %v2189_v60 = vpack.c.bf16 %v1945_v3, %v1942_v42  ;;  %v4702_v42 = vld [vmem:[%s6148_s11 + $0x8] sm:$0xff]  }
 0x3ac   : > { %v2188_v57 = vpack.c.bf16 %v1937_v13, %v1934_v37  ;;  %4611 = vmatprep.subr.bf16.mxu1 %v4702_v42 }
 0x3ad   : > { %4619 = vmatpush3.bf16.msra.mxu1 %v4702_v42 }
 0x3ae   : > { %4837 = vtanh.bf16 %v2188_v57  ;;  %v4392_v38 = vpop.f32.mrb[68].mxu1  ;;  %v4703_v57 = vld [vmem:[%s6148_s11 + $0x10] sm:$0xff]  }
 0x3af   : > { %4839 = vtanh.bf16 %v2189_v60  ;;  %v1949_v58 = vpop.f32.mrb[69].mxu1  ;;  %v1958_v8 = vadd.f32 %v4392_v38, %v5756_v27  ;;  %4612 = vmatprep.subr.bf16.mxu1 %v4703_v57 }
 0x3b0   : > { %v4393_v5 = vpop.f32.mrb[70].mxu1  ;;  %v1950_v36 = vadd.f32 %v5756_v27, %v1949_v58 }
 0x3b1   : > { %v1961_v18 = vadd.f32 %v4393_v5, %v5756_v27  ;;  %v1952_v6 = vpop.f32.mrb[71].mxu1  ;;  %4620 = vmatpush3.bf16.msra.mxu1 %v4703_v57 }
 0x3b2   : > { %v1953_v32 = vadd.f32 %v5756_v27, %v1952_v6 }
 0x3b3   : > { %v2191_v51 = vpack.c.bf16 %v1961_v18, %v1958_v8 }
 0x3b4   : > { %v2190_v13 = vpack.c.bf16 %v1953_v32, %v1950_v36  ;;  %v4704_v32 = vld [vmem:[%s6148_s11 + $0x18] sm:$0xff]  }
 0x3b5   : > { %4613 = vmatprep.subr.bf16.mxu1 %v4704_v32 }
 0x3b6   : > { %4841 = vtanh.bf16 %v2190_v13  ;;  %v4396_v38 = vpop.f32.mrb[72].mxu1  ;;  %4621 = vmatpush3.bf16.msra.mxu1 %v4704_v32 }
 0x3b7   : > { %4843 = vtanh.bf16 %v2191_v51  ;;  %v1965_v5 = vpop.f32.mrb[73].mxu1  ;;  %v1974_v6 = vadd.f32 %v4396_v38, %v5756_v27  ;;  %v4705_v38 = vld [vmem:[%s6148_s11 + $0x20] sm:$0xff]  }
 0x3b8   : > { %v4397_v37 = vpop.f32.mrb[74].mxu1  ;;  %v1966_v18 = vadd.f32 %v5756_v27, %v1965_v5  ;;  %4614 = vmatprep.subr.bf16.mxu1 %v4705_v38 }
 0x3b9   : > { %v4838_v3 = vpop.eup %4837  ;;  %v1977_v60 = vadd.f32 %v4397_v37, %v5756_v27  ;;  %v1968_v58 = vpop.f32.mrb[75].mxu1 }
 0x3ba   : > { %v4840_v8 = vpop.eup %4839  ;;  %v1969_v36 = vadd.f32 %v5756_v27, %v1968_v58  ;;  %4466 = vmatprep.mubr.bf16.mxu0 %v4838_v3  ;;  %4622 = vmatpush3.bf16.msra.mxu1 %v4705_v38 }
 0x3bb   : > { %v2193_v51 = vpack.c.bf16 %v1977_v60, %v1974_v6  ;;  %4467 = vmatmul.mubr.bf16.vlgmr.msra.gmra.mrb[128].mxu0 %v4840_v8 }
 0x3bc   : > { %v2192_v13 = vpack.c.bf16 %v1969_v36, %v1966_v18  ;;  %4531 = vmatpush3.bf16.msra.mxu0 %v4701_v4  ;;  %v4706_v4 = vld [vmem:[%s6148_s11 + $0x28] sm:$0xff]  }
 0x3bd   : > { %4532 = vmatprep.subr.bf16.mxu0 %v4702_v42  ;;  %4615 = vmatprep.subr.bf16.mxu1 %v4706_v4 }
 0x3be   : > { %4845 = vtanh.bf16 %v2192_v13  ;;  %v4400_v37 = vpop.f32.mrb[76].mxu1  ;;  %v4707_v13 = vld [vmem:[%s6148_s11 + $0x30] sm:$0xff]   ;;  %4623 = vmatpush3.bf16.msra.mxu1 %v4706_v4 }
 0x3bf   : > { %4847 = vtanh.bf16 %v2193_v51  ;;  %v1981_v50 = vpop.f32.mrb[77].mxu1  ;;  %v1990_v6 = vadd.f32 %v4400_v37, %v5756_v27  ;;  %4616 = vmatprep.subr.bf16.mxu1 %v4707_v13 }
 0x3c0   : > { %v4401_v5 = vpop.f32.mrb[78].mxu1  ;;  %4533 = vmatpush3.bf16.msra.mxu0 %v4702_v42  ;;  %v1982_v18 = vadd.f32 %v5756_v27, %v1981_v50 }
 0x3c1   : > { %v4842_v3 = vpop.eup %4841  ;;  %v1993_v60 = vadd.f32 %v4401_v5, %v5756_v27  ;;  %v1984_v58 = vpop.f32.mrb[79].mxu1  ;;  %4534 = vmatprep.subr.bf16.mxu0 %v4703_v57 }
 0x3c2   : > { %v4844_v8 = vpop.eup %4843  ;;  %v1985_v36 = vadd.f32 %v5756_v27, %v1984_v58  ;;  %4470 = vmatprep.mubr.bf16.mxu0 %v4842_v3  ;;  %4624 = vmatpush3.bf16.msra.mxu1 %v4707_v13 }
 0x3c3   : > { %v2195_v51 = vpack.c.bf16 %v1993_v60, %v1990_v6  ;;  %4471 = vmatmul.mubr.bf16.gmra.mrb[132].mxu0 %v4844_v8 }
 0x3c4   : > { %v2194_v42 = vpack.c.bf16 %v1985_v36, %v1982_v18  ;;  %4535 = vmatpush3.bf16.msra.mxu0 %v4703_v57 }
 0x3c5   : > { %4536 = vmatprep.subr.bf16.mxu0 %v4704_v32 }
 0x3c6   : > { %4849 = vtanh.bf16 %v2194_v42  ;;  %v4404_v37 = vpop.f32.mrb[80].mxu1 }
 0x3c7   : > { %4851 = vtanh.bf16 %v2195_v51  ;;  %v1997_v5 = vpop.f32.mrb[81].mxu1  ;;  %v2006_v6 = vadd.f32 %v4404_v37, %v5756_v27 }
 0x3c8   : > { %v4405_v50 = vpop.f32.mrb[82].mxu1  ;;  %4537 = vmatpush3.bf16.msra.mxu0 %v4704_v32  ;;  %v1998_v8 = vadd.f32 %v5756_v27, %v1997_v5 }
 0x3c9   : > { %v4846_v3 = vpop.eup %4845  ;;  %v2009_v60 = vadd.f32 %v4405_v50, %v5756_v27  ;;  %v2000_v58 = vpop.f32.mrb[83].mxu1  ;;  %4538 = vmatprep.subr.bf16.mxu0 %v4705_v38 }
 0x3ca   : > { %v4848_v57 = vpop.eup %4847  ;;  %v2001_v18 = vadd.f32 %v5756_v27, %v2000_v58  ;;  %4474 = vmatprep.mubr.bf16.mxu0 %v4846_v3 }
 0x3cb   : > { %v2197_v36 = vpack.c.bf16 %v2009_v60, %v2006_v6  ;;  %4475 = vmatmul.mubr.bf16.gmra.mrb[136].mxu0 %v4848_v57 }
 0x3cc   : > { %v2196_v51 = vpack.c.bf16 %v2001_v18, %v1998_v8  ;;  %4539 = vmatpush3.bf16.msra.mxu0 %v4705_v38 }
 0x3cd   : > { %4540 = vmatprep.subr.bf16.mxu0 %v4706_v4 }
 0x3ce   : > { %4853 = vtanh.bf16 %v2196_v51  ;;  %v4408_v32 = vpop.f32.mrb[84].mxu1 }
 0x3cf   : > { %4855 = vtanh.bf16 %v2197_v36  ;;  %v2013_v42 = vpop.f32.mrb[85].mxu1  ;;  %v2022_v39 = vadd.f32 %v4408_v32, %v5756_v27 }
 0x3d0   : > { %v4409_v37 = vpop.f32.mrb[86].mxu1  ;;  %4541 = vmatpush3.bf16.msra.mxu0 %v4706_v4  ;;  %v2014_v6 = vadd.f32 %v5756_v27, %v2013_v42 }
 0x3d1   : > { %v4850_v50 = vpop.eup %4849  ;;  %v2025_v5 = vadd.f32 %v4409_v37, %v5756_v27  ;;  %v2016_v53 = vpop.f32.mrb[87].mxu1  ;;  %4542 = vmatprep.subr.bf16.mxu0 %v4707_v13 }
 0x3d2   : > { %v4852_v3 = vpop.eup %4851  ;;  %v2017_v60 = vadd.f32 %v5756_v27, %v2016_v53  ;;  %4478 = vmatprep.mubr.bf16.mxu0 %v4850_v50 }
 0x3d3   : > { %v2199_v38 = vpack.c.bf16 %v2025_v5, %v2022_v39  ;;  %4479 = vmatmul.mubr.bf16.gmra.mrb[140].mxu0 %v4852_v3 }
 0x3d4   : > { %v2198_v58 = vpack.c.bf16 %v2017_v60, %v2014_v6  ;;  %4543 = vmatpush3.bf16.msra.mxu0 %v4707_v13 }
 0x3d6   : > { %4857 = vtanh.bf16 %v2198_v58  ;;  %v4412_v57 = vpop.f32.mrb[88].mxu1 }
 0x3d7   : > { %4859 = vtanh.bf16 %v2199_v38  ;;  %v2029_v4 = vpop.f32.mrb[89].mxu1  ;;  %v2038_v36 = vadd.f32 %v4412_v57, %v5756_v27 }
 0x3d8   : > { %v4413_v8 = vpop.f32.mrb[90].mxu1  ;;  %v2030_v42 = vadd.f32 %v5756_v27, %v2029_v4 }
 0x3d9   : > { %v4854_v18 = vpop.eup %4853  ;;  %v2041_v51 = vadd.f32 %v4413_v8, %v5756_v27  ;;  %v2032_v32 = vpop.f32.mrb[91].mxu1 }
 0x3da   : > { %v4856_v37 = vpop.eup %4855  ;;  %v2033_v53 = vadd.f32 %v5756_v27, %v2032_v32  ;;  %4482 = vmatprep.mubr.bf16.mxu0 %v4854_v18 }
 0x3db   : > { %v2201_v39 = vpack.c.bf16 %v2041_v51, %v2038_v36  ;;  %4483 = vmatmul.mubr.bf16.gmra.mrb[144].mxu0 %v4856_v37 }
 0x3dc   : > { %v2200_v13 = vpack.c.bf16 %v2033_v53, %v2030_v42 }
 0x3de   : > { %4861 = vtanh.bf16 %v2200_v13  ;;  %v4416_v50 = vpop.f32.mrb[92].mxu1 }
 0x3df   : > { %4863 = vtanh.bf16 %v2201_v39  ;;  %v2045_v5 = vpop.f32.mrb[93].mxu1  ;;  %v2054_v60 = vadd.f32 %v4416_v50, %v5756_v27 }
 0x3e0   : > { %v4417_v3 = vpop.f32.mrb[94].mxu1  ;;  %v2046_v4 = vadd.f32 %v5756_v27, %v2045_v5 }
 0x3e1   : > { %v4858_v6 = vpop.eup %4857  ;;  %v2057_v38 = vadd.f32 %v4417_v3, %v5756_v27  ;;  %v2048_v58 = vpop.f32.mrb[95].mxu1 }
 0x3e2   : > { %v4860_v57 = vpop.eup %4859  ;;  %v2049_v8 = vadd.f32 %v5756_v27, %v2048_v58  ;;  %4486 = vmatprep.mubr.bf16.mxu0 %v4858_v6 }
 0x3e3   : > { %v2203_v18 = vpack.c.bf16 %v2057_v38, %v2054_v60  ;;  %4487 = vmatmul.mubr.bf16.gmra.mrb[148].mxu0 %v4860_v57 }
 0x3e4   : > { %v2202_v36 = vpack.c.bf16 %v2049_v8, %v2046_v4 }
 0x3e6   : > { %4865 = vtanh.bf16 %v2202_v36  ;;  %v4420_v51 = vpop.f32.mrb[96].mxu1 }
 0x3e7   : > { %4867 = vtanh.bf16 %v2203_v18  ;;  %v2061_v32 = vpop.f32.mrb[97].mxu1  ;;  %v2070_v53 = vadd.f32 %v4420_v51, %v5756_v27 }
 0x3e8   : > { %v4421_v37 = vpop.f32.mrb[98].mxu1  ;;  %v2062_v5 = vadd.f32 %v5756_v27, %v2061_v32 }
 0x3e9   : > { %v4862_v42 = vpop.eup %4861  ;;  %v2073_v39 = vadd.f32 %v4421_v37, %v5756_v27  ;;  %v2064_v13 = vpop.f32.mrb[99].mxu1 }
 0x3ea   : > { %v4864_v50 = vpop.eup %4863  ;;  %v2065_v3 = vadd.f32 %v5756_v27, %v2064_v13  ;;  %4490 = vmatprep.mubr.bf16.mxu0 %v4862_v42 }
 0x3eb   : > { %v2205_v6 = vpack.c.bf16 %v2073_v39, %v2070_v53  ;;  %4491 = vmatmul.mubr.bf16.gmra.mrb[152].mxu0 %v4864_v50 }
 0x3ec   : > { %v2204_v60 = vpack.c.bf16 %v2065_v3, %v2062_v5 }
 0x3ee   : > { %4869 = vtanh.bf16 %v2204_v60  ;;  %v4424_v38 = vpop.f32.mrb[100].mxu1 }
 0x3ef   : > { %4871 = vtanh.bf16 %v2205_v6  ;;  %v2077_v58 = vpop.f32.mrb[101].mxu1  ;;  %v2086_v8 = vadd.f32 %v4424_v38, %v5756_v27 }
 0x3f0   : > { %v4425_v57 = vpop.f32.mrb[102].mxu1  ;;  %v2078_v32 = vadd.f32 %v5756_v27, %v2077_v58 }
 0x3f1   : > { %v4866_v4 = vpop.eup %4865  ;;  %v2089_v18 = vadd.f32 %v4425_v57, %v5756_v27  ;;  %v2080_v36 = vpop.f32.mrb[103].mxu1 }
 0x3f2   : > { %v4868_v51 = vpop.eup %4867  ;;  %v2081_v37 = vadd.f32 %v5756_v27, %v2080_v36  ;;  %4494 = vmatprep.mubr.bf16.mxu0 %v4866_v4 }
 0x3f3   : > { %v2207_v42 = vpack.c.bf16 %v2089_v18, %v2086_v8  ;;  %4495 = vmatmul.mubr.bf16.gmra.mrb[156].mxu0 %v4868_v51 }
 0x3f4   : > { %v2206_v53 = vpack.c.bf16 %v2081_v37, %v2078_v32 }
 0x3f6   : > { %4873 = vtanh.bf16 %v2206_v53  ;;  %v4428_v39 = vpop.f32.mrb[104].mxu1 }
 0x3f7   : > { %4875 = vtanh.bf16 %v2207_v42  ;;  %v2093_v13 = vpop.f32.mrb[105].mxu1  ;;  %v2102_v3 = vadd.f32 %v4428_v39, %v5756_v27 }
 0x3f8   : > { %v4429_v50 = vpop.f32.mrb[106].mxu1  ;;  %v2094_v58 = vadd.f32 %v5756_v27, %v2093_v13 }
 0x3f9   : > { %v4870_v5 = vpop.eup %4869  ;;  %v2105_v6 = vadd.f32 %v4429_v50, %v5756_v27  ;;  %v2096_v60 = vpop.f32.mrb[107].mxu1 }
 0x3fa   : > { %v4872_v38 = vpop.eup %4871  ;;  %v2097_v57 = vadd.f32 %v5756_v27, %v2096_v60  ;;  %4498 = vmatprep.mubr.bf16.mxu0 %v4870_v5 }
 0x3fb   : > { %v2209_v4 = vpack.c.bf16 %v2105_v6, %v2102_v3  ;;  %4499 = vmatmul.mubr.bf16.gmra.mrb[160].mxu0 %v4872_v38 }
 0x3fc   : > { %v2208_v8 = vpack.c.bf16 %v2097_v57, %v2094_v58 }
 0x3fe   : > { %4877 = vtanh.bf16 %v2208_v8  ;;  %v4432_v18 = vpop.f32.mrb[108].mxu1 }
 0x3ff   : > { %4879 = vtanh.bf16 %v2209_v4  ;;  %v2109_v36 = vpop.f32.mrb[109].mxu1  ;;  %v2118_v37 = vadd.f32 %v4432_v18, %v5756_v27 }
 0x400   : > { %v4433_v51 = vpop.f32.mrb[110].mxu1  ;;  %v2110_v13 = vadd.f32 %v5756_v27, %v2109_v36 }
 0x401   : > { %v4874_v32 = vpop.eup %4873  ;;  %v2121_v42 = vadd.f32 %v4433_v51, %v5756_v27  ;;  %v2112_v53 = vpop.f32.mrb[111].mxu1 }
 0x402   : > { %v4876_v39 = vpop.eup %4875  ;;  %v2113_v50 = vadd.f32 %v5756_v27, %v2112_v53  ;;  %4502 = vmatprep.mubr.bf16.mxu0 %v4874_v32 }
 0x403   : > { %v2211_v5 = vpack.c.bf16 %v2121_v42, %v2118_v37  ;;  %4503 = vmatmul.mubr.bf16.gmra.mrb[164].mxu0 %v4876_v39 }
 0x404   : > { %v2210_v3 = vpack.c.bf16 %v2113_v50, %v2110_v13 }
 0x406   : > { %4881 = vtanh.bf16 %v2210_v3  ;;  %v4436_v6 = vpop.f32.mrb[112].mxu1 }
 0x407   : > { %4883 = vtanh.bf16 %v2211_v5  ;;  %v2125_v60 = vpop.f32.mrb[113].mxu1  ;;  %v2134_v57 = vadd.f32 %v4436_v6, %v5756_v27 }
 0x408   : > { %v4437_v38 = vpop.f32.mrb[114].mxu1  ;;  %v2126_v36 = vadd.f32 %v5756_v27, %v2125_v60 }
 0x409   : > { %v4878_v58 = vpop.eup %4877  ;;  %v2137_v4 = vadd.f32 %v4437_v38, %v5756_v27  ;;  %v2128_v8 = vpop.f32.mrb[115].mxu1 }
 0x40a   : > { %v4880_v18 = vpop.eup %4879  ;;  %v2129_v51 = vadd.f32 %v5756_v27, %v2128_v8  ;;  %4506 = vmatprep.mubr.bf16.mxu0 %v4878_v58 }
 0x40b   : > { %v2213_v32 = vpack.c.bf16 %v2137_v4, %v2134_v57  ;;  %4507 = vmatmul.mubr.bf16.gmra.mrb[168].mxu0 %v4880_v18 }
 0x40c   : > { %v2212_v37 = vpack.c.bf16 %v2129_v51, %v2126_v36 }
 0x40e   : > { %4885 = vtanh.bf16 %v2212_v37  ;;  %v4440_v42 = vpop.f32.mrb[116].mxu1 }
 0x40f   : > { %4887 = vtanh.bf16 %v2213_v32  ;;  %v2141_v53 = vpop.f32.mrb[117].mxu1  ;;  %v2150_v50 = vadd.f32 %v4440_v42, %v5756_v27 }
 0x410   : > { %v4441_v39 = vpop.f32.mrb[118].mxu1  ;;  %v2142_v60 = vadd.f32 %v5756_v27, %v2141_v53 }
 0x411   : > { %v4882_v13 = vpop.eup %4881  ;;  %v2153_v5 = vadd.f32 %v4441_v39, %v5756_v27  ;;  %v2144_v3 = vpop.f32.mrb[119].mxu1 }
 0x412   : > { %v4884_v6 = vpop.eup %4883  ;;  %v2145_v38 = vadd.f32 %v5756_v27, %v2144_v3  ;;  %4510 = vmatprep.mubr.bf16.mxu0 %v4882_v13 }
 0x413   : > { %v2215_v58 = vpack.c.bf16 %v2153_v5, %v2150_v50  ;;  %4511 = vmatmul.mubr.bf16.gmra.mrb[172].mxu0 %v4884_v6  ;;  %v4708_v5 = vld [vmem:[%s6148_s11 + $0x38] sm:$0xff]  }
 0x414   : > { %v2214_v57 = vpack.c.bf16 %v2145_v38, %v2142_v60  ;;  %4617 = vmatprep.subr.bf16.mxu1 %v4708_v5  ;;  %4544 = vmatprep.subr.bf16.mxu0 %v4708_v5 }
 0x415   : > { %4625 = vmatpush3.bf16.msra.mxu1 %v4708_v5  ;;  %4545 = vmatpush3.bf16.msra.mxu0 %v4708_v5 }
 0x416   : > { %4889 = vtanh.bf16 %v2214_v57  ;;  %v4444_v4 = vpop.f32.mrb[120].mxu1 }
 0x417   : > { %4891 = vtanh.bf16 %v2215_v58  ;;  %v2157_v8 = vpop.f32.mrb[121].mxu1  ;;  %v2166_v51 = vadd.f32 %v4444_v4, %v5756_v27 }
 0x418   : > { %v4445_v18 = vpop.f32.mrb[122].mxu1  ;;  %v2158_v53 = vadd.f32 %v5756_v27, %v2157_v8 }
 0x419   : > { %v4886_v36 = vpop.eup %4885  ;;  %v2169_v32 = vadd.f32 %v4445_v18, %v5756_v27  ;;  %v2160_v37 = vpop.f32.mrb[123].mxu1 }
 0x41a   : > { %v4888_v42 = vpop.eup %4887  ;;  %v2161_v39 = vadd.f32 %v5756_v27, %v2160_v37  ;;  %4514 = vmatprep.mubr.bf16.mxu0 %v4886_v36 }
 0x41b   : > { %v2217_v13 = vpack.c.bf16 %v2169_v32, %v2166_v51  ;;  %4515 = vmatmul.mubr.bf16.gmra.mrb[176].mxu0 %v4888_v42 }
 0x41c   : > { %v2216_v50 = vpack.c.bf16 %v2161_v39, %v2158_v53 }
 0x41e   : > { %4893 = vtanh.bf16 %v2216_v50  ;;  %v4448_v3 = vpop.f32.mrb[124].mxu1  ;;  %v5849_v50 = vld [vmem:[%s6147_s10] ss:$0 sm:$0xff] }
 0x41f   : > { %4895 = vtanh.bf16 %v2217_v13  ;;  %v2173_v6 = vpop.f32.mrb[125].mxu1  ;;  %v2182_v58 = vadd.f32 %v4448_v3, %v5756_v27 }
 0x420   : > { %v4449_v60 = vpop.f32.mrb[126].mxu1  ;;  %v2174_v18 = vadd.f32 %v5756_v27, %v2173_v6 }
 0x421   : > { %v4890_v38 = vpop.eup %4889  ;;  %v2185_v57 = vadd.f32 %v4449_v60, %v5756_v27  ;;  %v2176_v4 = vpop.f32.mrb[127].mxu1 }
 0x422   : > { %v4892_v8 = vpop.eup %4891  ;;  %v2177_v36 = vadd.f32 %v5756_v27, %v2176_v4  ;;  %4518 = vmatprep.mubr.bf16.mxu0 %v4890_v38 }
 0x423   : > { %v2219_v51 = vpack.c.bf16 %v2185_v57, %v2182_v58  ;;  %4519 = vmatmul.mubr.bf16.gmra.mrb[180].mxu0 %v4892_v8 }
 0x424   : > { %v2218_v32 = vpack.c.bf16 %v2177_v36, %v2174_v18 }
 0x426   : > { %4897 = vtanh.bf16 %v2218_v32 }
 0x427   : > { %4899 = vtanh.bf16 %v2219_v51 }
 0x429   : > { %v4894_v37 = vpop.eup %4893 }
 0x42a   : > { %v4896_v42 = vpop.eup %4895  ;;  %4522 = vmatprep.mubr.bf16.mxu0 %v4894_v37 }
 0x42b   : > { %4523 = vmatmul.mubr.bf16.gmra.mrb[184].mxu0 %v4896_v42 }
 0x431   : > { %v4898_v53 = vpop.eup %4897 }
 0x432   : > { %v4900_v39 = vpop.eup %4899  ;;  %4526 = vmatprep.mubr.bf16.mxu0 %v4898_v53 }
 0x433   : > { %4527 = vmatmul.mubr.bf16.gmra.mrb[188].mxu0 %v4900_v39 }
 0x48e   : > { %v4468_v13 = vpop.f32.mrb[128].mxu0 }
 0x48f   : > { %v2357_v27 = vpop.f32.mrb[129].mxu0  ;;  %v2366_v3 = vadd.f32 %v4468_v13, %v5849_v50 }
 0x490   : > { %v4469_v5 = vpop.f32.mrb[130].mxu0  ;;  %v2358_v38 = vadd.f32 %v5849_v50, %v2357_v27 }
 0x491   : > { %v2369_v6 = vadd.f32 %v4469_v5, %v5849_v50  ;;  %v2360_v60 = vpop.f32.mrb[131].mxu0 }
 0x492   : > { %v2361_v58 = vadd.f32 %v5849_v50, %v2360_v60 }
 0x493   : > { %v2613_v57 = vpack.c.bf16 %v2369_v6, %v2366_v3 }
 0x494   : > { %v2612_v4 = vpack.c.bf16 %v2361_v58, %v2358_v38 }
 0x496   : > { %4901 = vtanh.bf16 %v2612_v4  ;;  %v4472_v8 = vpop.f32.mrb[132].mxu0 }
 0x497   : > { %4903 = vtanh.bf16 %v2613_v57  ;;  %v2373_v18 = vpop.f32.mrb[133].mxu0  ;;  %v2382_v51 = vadd.f32 %v4472_v8, %v5849_v50 }
 0x498   : > { %v4473_v36 = vpop.f32.mrb[134].mxu0  ;;  %v2374_v42 = vadd.f32 %v5849_v50, %v2373_v18 }
 0x499   : > { %v2385_v32 = vadd.f32 %v4473_v36, %v5849_v50  ;;  %v2376_v37 = vpop.f32.mrb[135].mxu0 }
 0x49a   : > { %v2377_v53 = vadd.f32 %v5849_v50, %v2376_v37 }
 0x49b   : > { %v2615_v39 = vpack.c.bf16 %v2385_v32, %v2382_v51 }
 0x49c   : > { %v2614_v13 = vpack.c.bf16 %v2377_v53, %v2374_v42 }
 0x49e   : > { %4905 = vtanh.bf16 %v2614_v13  ;;  %v4476_v27 = vpop.f32.mrb[136].mxu0 }
 0x49f   : > { %4907 = vtanh.bf16 %v2615_v39  ;;  %v2389_v5 = vpop.f32.mrb[137].mxu0  ;;  %v2398_v60 = vadd.f32 %v4476_v27, %v5849_v50 }
 0x4a0   : > { %v4477_v3 = vpop.f32.mrb[138].mxu0  ;;  %v2390_v4 = vadd.f32 %v5849_v50, %v2389_v5 }
 0x4a1   : > { %v4902_v6 = vpop.eup %4901  ;;  %v2401_v38 = vadd.f32 %v4477_v3, %v5849_v50  ;;  %v2392_v58 = vpop.f32.mrb[139].mxu0 }
 0x4a2   : > { %v4904_v57 = vpop.eup %4903  ;;  %v2393_v8 = vadd.f32 %v5849_v50, %v2392_v58  ;;  %4546 = vmatprep.mubr.bf16.mxu0 %v4902_v6 }
 0x4a3   : > { %v2617_v18 = vpack.c.bf16 %v2401_v38, %v2398_v60  ;;  %4547 = vmatmul.mubr.bf16.vlgmr.msra.gmra.mrb[192].mxu0 %v4904_v57 }
 0x4a4   : > { %v2616_v36 = vpack.c.bf16 %v2393_v8, %v2390_v4 }
 0x4a6   : > { %4909 = vtanh.bf16 %v2616_v36  ;;  %v4480_v51 = vpop.f32.mrb[140].mxu0 }
 0x4a7   : > { %4911 = vtanh.bf16 %v2617_v18  ;;  %v2405_v32 = vpop.f32.mrb[141].mxu0  ;;  %v2414_v53 = vadd.f32 %v4480_v51, %v5849_v50 }
 0x4a8   : > { %v4481_v37 = vpop.f32.mrb[142].mxu0  ;;  %v2406_v5 = vadd.f32 %v5849_v50, %v2405_v32 }
 0x4a9   : > { %v4906_v42 = vpop.eup %4905  ;;  %v2417_v39 = vadd.f32 %v4481_v37, %v5849_v50  ;;  %v2408_v13 = vpop.f32.mrb[143].mxu0 }
 0x4aa   : > { %v4908_v27 = vpop.eup %4907  ;;  %v2409_v3 = vadd.f32 %v5849_v50, %v2408_v13  ;;  %4550 = vmatprep.mubr.bf16.mxu1 %v4906_v42 }
 0x4ab   : > { %v2619_v6 = vpack.c.bf16 %v2417_v39, %v2414_v53  ;;  %4551 = vmatmul.mubr.bf16.vlgmr.msra.gmra.mrb[128].mxu1 %v4908_v27 }
 0x4ac   : > { %v2618_v60 = vpack.c.bf16 %v2409_v3, %v2406_v5 }
 0x4ae   : > { %4913 = vtanh.bf16 %v2618_v60  ;;  %v4484_v38 = vpop.f32.mrb[144].mxu0 }
 0x4af   : > { %4915 = vtanh.bf16 %v2619_v6  ;;  %v2421_v58 = vpop.f32.mrb[145].mxu0  ;;  %v2430_v8 = vadd.f32 %v4484_v38, %v5849_v50 }
 0x4b0   : > { %v4485_v57 = vpop.f32.mrb[146].mxu0  ;;  %v2422_v32 = vadd.f32 %v5849_v50, %v2421_v58 }
 0x4b1   : > { %v4910_v4 = vpop.eup %4909  ;;  %v2433_v18 = vadd.f32 %v4485_v57, %v5849_v50  ;;  %v2424_v36 = vpop.f32.mrb[147].mxu0 }
 0x4b2   : > { %v4912_v51 = vpop.eup %4911  ;;  %v2425_v37 = vadd.f32 %v5849_v50, %v2424_v36  ;;  %4554 = vmatprep.mubr.bf16.mxu1 %v4910_v4 }
 0x4b3   : > { %v2621_v42 = vpack.c.bf16 %v2433_v18, %v2430_v8  ;;  %4555 = vmatmul.mubr.bf16.gmra.mrb[132].mxu1 %v4912_v51 }
 0x4b4   : > { %v2620_v53 = vpack.c.bf16 %v2425_v37, %v2422_v32 }
 0x4b6   : > { %4917 = vtanh.bf16 %v2620_v53  ;;  %v4488_v39 = vpop.f32.mrb[148].mxu0 }
 0x4b7   : > { %4919 = vtanh.bf16 %v2621_v42  ;;  %v2437_v13 = vpop.f32.mrb[149].mxu0  ;;  %v2446_v3 = vadd.f32 %v4488_v39, %v5849_v50 }
 0x4b8   : > { %v4489_v27 = vpop.f32.mrb[150].mxu0  ;;  %v2438_v58 = vadd.f32 %v5849_v50, %v2437_v13 }
 0x4b9   : > { %v4914_v5 = vpop.eup %4913  ;;  %v2449_v6 = vadd.f32 %v4489_v27, %v5849_v50  ;;  %v2440_v60 = vpop.f32.mrb[151].mxu0 }
 0x4ba   : > { %v4916_v38 = vpop.eup %4915  ;;  %v2441_v57 = vadd.f32 %v5849_v50, %v2440_v60  ;;  %4558 = vmatprep.mubr.bf16.mxu1 %v4914_v5 }
 0x4bb   : > { %v2623_v4 = vpack.c.bf16 %v2449_v6, %v2446_v3  ;;  %4559 = vmatmul.mubr.bf16.gmra.mrb[136].mxu1 %v4916_v38 }
 0x4bc   : > { %v2622_v8 = vpack.c.bf16 %v2441_v57, %v2438_v58 }
 0x4be   : > { %4921 = vtanh.bf16 %v2622_v8  ;;  %v4492_v18 = vpop.f32.mrb[152].mxu0 }
 0x4bf   : > { %4923 = vtanh.bf16 %v2623_v4  ;;  %v2453_v36 = vpop.f32.mrb[153].mxu0  ;;  %v2462_v37 = vadd.f32 %v4492_v18, %v5849_v50 }
 0x4c0   : > { %v4493_v51 = vpop.f32.mrb[154].mxu0  ;;  %v2454_v13 = vadd.f32 %v5849_v50, %v2453_v36 }
 0x4c1   : > { %v4918_v32 = vpop.eup %4917  ;;  %v2465_v42 = vadd.f32 %v4493_v51, %v5849_v50  ;;  %v2456_v53 = vpop.f32.mrb[155].mxu0 }
 0x4c2   : > { %v4920_v39 = vpop.eup %4919  ;;  %v2457_v27 = vadd.f32 %v5849_v50, %v2456_v53  ;;  %4562 = vmatprep.mubr.bf16.mxu1 %v4918_v32 }
 0x4c3   : > { %v2625_v5 = vpack.c.bf16 %v2465_v42, %v2462_v37  ;;  %4563 = vmatmul.mubr.bf16.gmra.mrb[140].mxu1 %v4920_v39 }
 0x4c4   : > { %v2624_v3 = vpack.c.bf16 %v2457_v27, %v2454_v13 }
 0x4c6   : > { %4925 = vtanh.bf16 %v2624_v3  ;;  %v4496_v6 = vpop.f32.mrb[156].mxu0 }
 0x4c7   : > { %4927 = vtanh.bf16 %v2625_v5  ;;  %v2469_v60 = vpop.f32.mrb[157].mxu0  ;;  %v2478_v57 = vadd.f32 %v4496_v6, %v5849_v50 }
 0x4c8   : > { %v4497_v38 = vpop.f32.mrb[158].mxu0  ;;  %v2470_v36 = vadd.f32 %v5849_v50, %v2469_v60 }
 0x4c9   : > { %v4922_v58 = vpop.eup %4921  ;;  %v2481_v4 = vadd.f32 %v4497_v38, %v5849_v50  ;;  %v2472_v8 = vpop.f32.mrb[159].mxu0 }
 0x4ca   : > { %v4924_v18 = vpop.eup %4923  ;;  %v2473_v51 = vadd.f32 %v5849_v50, %v2472_v8  ;;  %4566 = vmatprep.mubr.bf16.mxu1 %v4922_v58 }
 0x4cb   : > { %v2627_v32 = vpack.c.bf16 %v2481_v4, %v2478_v57  ;;  %4567 = vmatmul.mubr.bf16.gmra.mrb[144].mxu1 %v4924_v18 }
 0x4cc   : > { %v2626_v37 = vpack.c.bf16 %v2473_v51, %v2470_v36 }
 0x4ce   : > { %4929 = vtanh.bf16 %v2626_v37  ;;  %v4500_v42 = vpop.f32.mrb[160].mxu0 }
 0x4cf   : > { %4931 = vtanh.bf16 %v2627_v32  ;;  %v2485_v53 = vpop.f32.mrb[161].mxu0  ;;  %v2494_v27 = vadd.f32 %v4500_v42, %v5849_v50 }
 0x4d0   : > { %v4501_v39 = vpop.f32.mrb[162].mxu0  ;;  %v2486_v60 = vadd.f32 %v5849_v50, %v2485_v53 }
 0x4d1   : > { %v4926_v13 = vpop.eup %4925  ;;  %v2497_v5 = vadd.f32 %v4501_v39, %v5849_v50  ;;  %v2488_v3 = vpop.f32.mrb[163].mxu0 }
 0x4d2   : > { %v4928_v6 = vpop.eup %4927  ;;  %v2489_v38 = vadd.f32 %v5849_v50, %v2488_v3  ;;  %4570 = vmatprep.mubr.bf16.mxu1 %v4926_v13 }
 0x4d3   : > { %v2629_v58 = vpack.c.bf16 %v2497_v5, %v2494_v27  ;;  %4571 = vmatmul.mubr.bf16.gmra.mrb[148].mxu1 %v4928_v6 }
 0x4d4   : > { %v2628_v57 = vpack.c.bf16 %v2489_v38, %v2486_v60 }
 0x4d6   : > { %4933 = vtanh.bf16 %v2628_v57  ;;  %v4504_v4 = vpop.f32.mrb[164].mxu0 }
 0x4d7   : > { %4935 = vtanh.bf16 %v2629_v58  ;;  %v2501_v8 = vpop.f32.mrb[165].mxu0  ;;  %v2510_v51 = vadd.f32 %v4504_v4, %v5849_v50 }
 0x4d8   : > { %v4505_v18 = vpop.f32.mrb[166].mxu0  ;;  %v2502_v53 = vadd.f32 %v5849_v50, %v2501_v8 }
 0x4d9   : > { %v4930_v36 = vpop.eup %4929  ;;  %v2513_v32 = vadd.f32 %v4505_v18, %v5849_v50  ;;  %v2504_v37 = vpop.f32.mrb[167].mxu0 }
 0x4da   : > { %v4932_v42 = vpop.eup %4931  ;;  %v2505_v39 = vadd.f32 %v5849_v50, %v2504_v37  ;;  %4574 = vmatprep.mubr.bf16.mxu1 %v4930_v36 }
 0x4db   : > { %v2631_v13 = vpack.c.bf16 %v2513_v32, %v2510_v51  ;;  %4575 = vmatmul.mubr.bf16.gmra.mrb[152].mxu1 %v4932_v42 }
 0x4dc   : > { %v2630_v27 = vpack.c.bf16 %v2505_v39, %v2502_v53 }
 0x4de   : > { %4937 = vtanh.bf16 %v2630_v27  ;;  %v4508_v5 = vpop.f32.mrb[168].mxu0 }
 0x4df   : > { %4939 = vtanh.bf16 %v2631_v13  ;;  %v2517_v3 = vpop.f32.mrb[169].mxu0  ;;  %v2526_v38 = vadd.f32 %v4508_v5, %v5849_v50 }
 0x4e0   : > { %v4509_v6 = vpop.f32.mrb[170].mxu0  ;;  %v2518_v8 = vadd.f32 %v5849_v50, %v2517_v3 }
 0x4e1   : > { %v4934_v60 = vpop.eup %4933  ;;  %v2529_v58 = vadd.f32 %v4509_v6, %v5849_v50  ;;  %v2520_v57 = vpop.f32.mrb[171].mxu0 }
 0x4e2   : > { %v4936_v4 = vpop.eup %4935  ;;  %v2521_v18 = vadd.f32 %v5849_v50, %v2520_v57  ;;  %4578 = vmatprep.mubr.bf16.mxu1 %v4934_v60 }
 0x4e3   : > { %v2633_v36 = vpack.c.bf16 %v2529_v58, %v2526_v38  ;;  %4579 = vmatmul.mubr.bf16.gmra.mrb[156].mxu1 %v4936_v4 }
 0x4e4   : > { %v2632_v51 = vpack.c.bf16 %v2521_v18, %v2518_v8 }
 0x4e6   : > { %4941 = vtanh.bf16 %v2632_v51  ;;  %v4512_v32 = vpop.f32.mrb[172].mxu0 }
 0x4e7   : > { %4943 = vtanh.bf16 %v2633_v36  ;;  %v2533_v37 = vpop.f32.mrb[173].mxu0  ;;  %v2542_v39 = vadd.f32 %v4512_v32, %v5849_v50 }
 0x4e8   : > { %v4513_v42 = vpop.f32.mrb[174].mxu0  ;;  %v2534_v3 = vadd.f32 %v5849_v50, %v2533_v37 }
 0x4e9   : > { %v4938_v53 = vpop.eup %4937  ;;  %v2545_v13 = vadd.f32 %v4513_v42, %v5849_v50  ;;  %v2536_v27 = vpop.f32.mrb[175].mxu0 }
 0x4ea   : > { %v4940_v5 = vpop.eup %4939  ;;  %v2537_v6 = vadd.f32 %v5849_v50, %v2536_v27  ;;  %4582 = vmatprep.mubr.bf16.mxu1 %v4938_v53 }
 0x4eb   : > { %v2635_v60 = vpack.c.bf16 %v2545_v13, %v2542_v39  ;;  %4583 = vmatmul.mubr.bf16.gmra.mrb[160].mxu1 %v4940_v5 }
 0x4ec   : > { %v2634_v38 = vpack.c.bf16 %v2537_v6, %v2534_v3 }
 0x4ee   : > { %4945 = vtanh.bf16 %v2634_v38  ;;  %v4516_v58 = vpop.f32.mrb[176].mxu0 }
 0x4ef   : > { %4947 = vtanh.bf16 %v2635_v60  ;;  %v2549_v57 = vpop.f32.mrb[177].mxu0  ;;  %v2558_v18 = vadd.f32 %v4516_v58, %v5849_v50 }
 0x4f0   : > { %v4517_v4 = vpop.f32.mrb[178].mxu0  ;;  %v2550_v37 = vadd.f32 %v5849_v50, %v2549_v57 }
 0x4f1   : > { %v4942_v8 = vpop.eup %4941  ;;  %v2561_v36 = vadd.f32 %v4517_v4, %v5849_v50  ;;  %v2552_v51 = vpop.f32.mrb[179].mxu0 }
 0x4f2   : > { %v4944_v32 = vpop.eup %4943  ;;  %v2553_v42 = vadd.f32 %v5849_v50, %v2552_v51  ;;  %4586 = vmatprep.mubr.bf16.mxu1 %v4942_v8 }
 0x4f3   : > { %v2637_v53 = vpack.c.bf16 %v2561_v36, %v2558_v18  ;;  %4587 = vmatmul.mubr.bf16.gmra.mrb[164].mxu1 %v4944_v32 }
 0x4f4   : > { %v2636_v39 = vpack.c.bf16 %v2553_v42, %v2550_v37 }
 0x4f6   : > { %4949 = vtanh.bf16 %v2636_v39  ;;  %v4520_v13 = vpop.f32.mrb[180].mxu0 }
 0x4f7   : > { %4951 = vtanh.bf16 %v2637_v53  ;;  %v2565_v27 = vpop.f32.mrb[181].mxu0  ;;  %v2574_v6 = vadd.f32 %v4520_v13, %v5849_v50 }
 0x4f8   : > { %v4521_v5 = vpop.f32.mrb[182].mxu0  ;;  %v2566_v57 = vadd.f32 %v5849_v50, %v2565_v27 }
 0x4f9   : > { %v4946_v3 = vpop.eup %4945  ;;  %v2577_v60 = vadd.f32 %v4521_v5, %v5849_v50  ;;  %v2568_v38 = vpop.f32.mrb[183].mxu0 }
 0x4fa   : > { %v4948_v58 = vpop.eup %4947  ;;  %v2569_v4 = vadd.f32 %v5849_v50, %v2568_v38  ;;  %4590 = vmatprep.mubr.bf16.mxu1 %v4946_v3 }
 0x4fb   : > { %v2639_v8 = vpack.c.bf16 %v2577_v60, %v2574_v6  ;;  %4591 = vmatmul.mubr.bf16.gmra.mrb[168].mxu1 %v4948_v58 }
 0x4fc   : > { %v2638_v18 = vpack.c.bf16 %v2569_v4, %v2566_v57 }
 0x4fe   : > { %4953 = vtanh.bf16 %v2638_v18  ;;  %v4524_v36 = vpop.f32.mrb[184].mxu0 }
 0x4ff   : > { %4955 = vtanh.bf16 %v2639_v8  ;;  %v2581_v51 = vpop.f32.mrb[185].mxu0  ;;  %v2590_v42 = vadd.f32 %v4524_v36, %v5849_v50 }
 0x500   : > { %v4525_v32 = vpop.f32.mrb[186].mxu0  ;;  %v2582_v27 = vadd.f32 %v5849_v50, %v2581_v51 }
 0x501   : > { %v4950_v37 = vpop.eup %4949  ;;  %v2593_v53 = vadd.f32 %v4525_v32, %v5849_v50  ;;  %v2584_v39 = vpop.f32.mrb[187].mxu0 }
 0x502   : > { %v4952_v13 = vpop.eup %4951  ;;  %v2585_v5 = vadd.f32 %v5849_v50, %v2584_v39  ;;  %4594 = vmatprep.mubr.bf16.mxu1 %v4950_v37 }
 0x503   : > { %v2641_v3 = vpack.c.bf16 %v2593_v53, %v2590_v42  ;;  %4595 = vmatmul.mubr.bf16.gmra.mrb[172].mxu1 %v4952_v13 }
 0x504   : > { %v2640_v6 = vpack.c.bf16 %v2585_v5, %v2582_v27 }
 0x506   : > { %4957 = vtanh.bf16 %v2640_v6  ;;  %v4528_v60 = vpop.f32.mrb[188].mxu0 }
 0x507   : > { %4959 = vtanh.bf16 %v2641_v3  ;;  %v2597_v38 = vpop.f32.mrb[189].mxu0  ;;  %v2606_v4 = vadd.f32 %v4528_v60, %v5849_v50 }
 0x508   : > { %v4529_v58 = vpop.f32.mrb[190].mxu0  ;;  %v2598_v51 = vadd.f32 %v5849_v50, %v2597_v38 }
 0x509   : > { %v4954_v57 = vpop.eup %4953  ;;  %v2609_v8 = vadd.f32 %v4529_v58, %v5849_v50  ;;  %v2600_v18 = vpop.f32.mrb[191].mxu0 }
 0x50a   : > { %v4956_v36 = vpop.eup %4955  ;;  %v2601_v32 = vadd.f32 %v5849_v50, %v2600_v18  ;;  %4598 = vmatprep.mubr.bf16.mxu1 %v4954_v57  ;;  %v5918_v50 = vld [vmem:[%s6149_s12] ss:$0 sm:$0xff] }
 0x50b   : > { %v2643_v37 = vpack.c.bf16 %v2609_v8, %v2606_v4  ;;  %4599 = vmatmul.mubr.bf16.gmra.mrb[176].mxu1 %v4956_v36 }
 0x50c   : > { %v2642_v42 = vpack.c.bf16 %v2601_v32, %v2598_v51 }
 0x50e   : > { %4961 = vtanh.bf16 %v2642_v42 }
 0x50f   : > { %4963 = vtanh.bf16 %v2643_v37 }
 0x511   : > { %v4958_v53 = vpop.eup %4957 }
 0x512   : > { %v4960_v39 = vpop.eup %4959  ;;  %4602 = vmatprep.mubr.bf16.mxu1 %v4958_v53 }
 0x513   : > { %4603 = vmatmul.mubr.bf16.gmra.mrb[180].mxu1 %v4960_v39 }
 0x519   : > { %v4962_v13 = vpop.eup %4961 }
 0x51a   : > { %v4964_v27 = vpop.eup %4963  ;;  %4606 = vmatprep.mubr.bf16.mxu1 %v4962_v13 }
 0x51b   : > { %4607 = vmatmul.mubr.bf16.gmra.mrb[184].mxu1 %v4964_v27 }
 0x576   : > { %v4548_v5 = vpop.f32.mrb[192].mxu0 }
 0x577   : > { %v2790_v3 = vadd.f32 %v4548_v5, %v5918_v50  ;;  %v2781_v6 = vpop.f32.mrb[193].mxu0 }
 0x578   : > { %v2782_v60 = vadd.f32 %v5918_v50, %v2781_v6  ;;  %v4549_v38 = vpop.f32.mrb[194].mxu0 }
 0x579   : > { %v2793_v58 = vadd.f32 %v4549_v38, %v5918_v50  ;;  %v2784_v57 = vpop.f32.mrb[195].mxu0  ;;  %v3038_v8 = vadd.f32 %v2790_v3, %v5495_v12 }
 0x57a   : > { %v2785_v4 = vadd.f32 %v5918_v50, %v2784_v57  ;;  %v3036_v36 = vadd.f32 %v2782_v60, %v5486_v9 }
 0x57b   : > { %v3039_v18 = vadd.f32 %v2793_v58, %v5483_v7 }
 0x57c   : > { %v3037_v51 = vadd.f32 %v2785_v4, %v5489_v10 }
 0x57d   : > { %v3725_v32 = vpack.c.bf16 %v3039_v18, %v3038_v8 }
 0x57e   : > { %v3720_v37 = vpack.c.bf16 %v3037_v51, %v3036_v36  ;;  %v4552_v42 = vpop.f32.mrb[128].mxu1 }
 0x57f   : > { %3877 = vst [vmem:[%s5931_s17 + $0x8] sm:$0xff] %v3725_v32   ;;  %v2806_v53 = vadd.f32 %v4552_v42, %v5918_v50  ;;  %v2797_v39 = vpop.f32.mrb[129].mxu1 }
 0x580   : > { %3721 = vst [vmem:[%s5931_s17] sm:$0xff] %v3720_v37   ;;  %v2798_v7 = vadd.f32 %v5918_v50, %v2797_v39  ;;  %v4553_v12 = vpop.f32.mrb[130].mxu1 }
 0x581   : > { %v2809_v9 = vadd.f32 %v4553_v12, %v5918_v50  ;;  %v2800_v10 = vpop.f32.mrb[131].mxu1  ;;  %v3042_v27 = vadd.f32 %v2806_v53, %v5517_v24 }
 0x582   : > { %v2801_v13 = vadd.f32 %v5918_v50, %v2800_v10  ;;  %v3040_v3 = vadd.f32 %v2798_v7, %v5508_v21 }
 0x583   : > { %v3043_v5 = vadd.f32 %v2809_v9, %v5505_v19 }
 0x584   : > { %v3041_v6 = vadd.f32 %v2801_v13, %v5511_v22 }
 0x585   : > { %v3735_v60 = vpack.c.bf16 %v3043_v5, %v3042_v27 }
 0x586   : > { %v3730_v38 = vpack.c.bf16 %v3041_v6, %v3040_v3  ;;  %v4556_v58 = vpop.f32.mrb[132].mxu1 }
 0x587   : > { %3879 = vst [vmem:[%s5931_s17 + $0x18] sm:$0xff] %v3735_v60   ;;  %v2822_v57 = vadd.f32 %v4556_v58, %v5918_v50  ;;  %v2813_v4 = vpop.f32.mrb[133].mxu1 }
 0x588   : > { %3878 = vst [vmem:[%s5931_s17 + $0x10] sm:$0xff] %v3730_v38   ;;  %v2814_v8 = vadd.f32 %v5918_v50, %v2813_v4  ;;  %v4557_v18 = vpop.f32.mrb[134].mxu1 }
 0x589   : > { %v2825_v24 = vadd.f32 %v4557_v18, %v5918_v50  ;;  %v2816_v19 = vpop.f32.mrb[135].mxu1  ;;  %v3046_v22 = vadd.f32 %v2822_v57, %v5536_v35 }
 0x58a   : > { %v2817_v21 = vadd.f32 %v5918_v50, %v2816_v19  ;;  %v3044_v51 = vadd.f32 %v2814_v8, %v5530_v33 }
 0x58b   : > { %v3047_v36 = vadd.f32 %v2825_v24, %v5527_v31 }
 0x58c   : > { %v3045_v32 = vadd.f32 %v2817_v21, %v5533_v34 }
 0x58d   : > { %v3745_v37 = vpack.c.bf16 %v3047_v36, %v3046_v22 }
 0x58e   : > { %v3740_v42 = vpack.c.bf16 %v3045_v32, %v3044_v51  ;;  %v4560_v53 = vpop.f32.mrb[136].mxu1 }
 0x58f   : > { %3881 = vst [vmem:[%s5931_s17 + $0x28] sm:$0xff] %v3745_v37   ;;  %v2838_v39 = vadd.f32 %v4560_v53, %v5918_v50  ;;  %v2829_v7 = vpop.f32.mrb[137].mxu1 }
 0x590   : > { %3880 = vst [vmem:[%s5931_s17 + $0x20] sm:$0xff] %v3740_v42   ;;  %v2830_v12 = vadd.f32 %v5918_v50, %v2829_v7  ;;  %v4561_v9 = vpop.f32.mrb[138].mxu1 }
 0x591   : > { %v2841_v35 = vadd.f32 %v4561_v9, %v5918_v50  ;;  %v2832_v31 = vpop.f32.mrb[139].mxu1  ;;  %v3050_v34 = vadd.f32 %v2838_v39, %v5552_v46 }
 0x592   : > { %v2833_v33 = vadd.f32 %v5918_v50, %v2832_v31  ;;  %v3048_v13 = vadd.f32 %v2830_v12, %v5546_v44 }
 0x593   : > { %v3051_v10 = vadd.f32 %v2841_v35, %v5543_v41 }
 0x594   : > { %v3049_v27 = vadd.f32 %v2833_v33, %v5549_v45 }
 0x595   : > { %v3755_v5 = vpack.c.bf16 %v3051_v10, %v3050_v34 }
 0x596   : > { %v3750_v3 = vpack.c.bf16 %v3049_v27, %v3048_v13  ;;  %v4564_v6 = vpop.f32.mrb[140].mxu1 }
 0x597   : > { %3883 = vst [vmem:[%s5931_s17 + $0x38] sm:$0xff] %v3755_v5   ;;  %v2854_v60 = vadd.f32 %v4564_v6, %v5918_v50  ;;  %v2845_v38 = vpop.f32.mrb[141].mxu1 }
 0x598   : > { %3882 = vst [vmem:[%s5931_s17 + $0x30] sm:$0xff] %v3750_v3   ;;  %v2846_v58 = vadd.f32 %v5918_v50, %v2845_v38  ;;  %v4565_v57 = vpop.f32.mrb[142].mxu1 }
 0x599   : > { %v2857_v46 = vadd.f32 %v4565_v57, %v5918_v50  ;;  %v2848_v41 = vpop.f32.mrb[143].mxu1  ;;  %v3054_v45 = vadd.f32 %v2854_v60, %v5568_v56 }
 0x59a   : > { %v2849_v44 = vadd.f32 %v5918_v50, %v2848_v41  ;;  %v3052_v8 = vadd.f32 %v2846_v58, %v5562_v54 }
 0x59b   : > { %v3055_v4 = vadd.f32 %v2857_v46, %v5559_v52 }
 0x59c   : > { %v3053_v18 = vadd.f32 %v2849_v44, %v5565_v43 }
 0x59d   : > { %v3765_v24 = vpack.c.bf16 %v3055_v4, %v3054_v45 }
 0x59e   : > { %v3760_v19 = vpack.c.bf16 %v3053_v18, %v3052_v8  ;;  %v4568_v21 = vpop.f32.mrb[144].mxu1 }
 0x59f   : > { %3885 = vst [vmem:[%s5931_s17 + $0x48] sm:$0xff] %v3765_v24   ;;  %v2870_v22 = vadd.f32 %v4568_v21, %v5918_v50  ;;  %v2861_v36 = vpop.f32.mrb[145].mxu1 }
 0x5a0   : > { %3884 = vst [vmem:[%s5931_s17 + $0x40] sm:$0xff] %v3760_v19   ;;  %v2862_v51 = vadd.f32 %v5918_v50, %v2861_v36  ;;  %v4569_v32 = vpop.f32.mrb[146].mxu1 }
 0x5a1   : > { %v2873_v56 = vadd.f32 %v4569_v32, %v5918_v50  ;;  %v2864_v52 = vpop.f32.mrb[147].mxu1  ;;  %v3058_v43 = vadd.f32 %v2870_v22, %v5584_v55 }
 0x5a2   : > { %v2865_v54 = vadd.f32 %v5918_v50, %v2864_v52  ;;  %v3056_v42 = vadd.f32 %v2862_v51, %v5578_v0 }
 0x5a3   : > { %v3059_v37 = vadd.f32 %v2873_v56, %v5575_v62 }
 0x5a4   : > { %v3057_v53 = vadd.f32 %v2865_v54, %v5581_v1 }
 0x5a5   : > { %v3775_v39 = vpack.c.bf16 %v3059_v37, %v3058_v43 }
 0x5a6   : > { %v3770_v7 = vpack.c.bf16 %v3057_v53, %v3056_v42  ;;  %v4572_v12 = vpop.f32.mrb[148].mxu1 }
 0x5a7   : > { %3887 = vst [vmem:[%s5931_s17 + $0x58] sm:$0xff] %v3775_v39   ;;  %v2886_v9 = vadd.f32 %v4572_v12, %v5918_v50  ;;  %v2877_v35 = vpop.f32.mrb[149].mxu1 }
 0x5a8   : > { %3886 = vst [vmem:[%s5931_s17 + $0x50] sm:$0xff] %v3770_v7   ;;  %v2878_v31 = vadd.f32 %v5918_v50, %v2877_v35  ;;  %v4573_v33 = vpop.f32.mrb[150].mxu1 }
 0x5a9   : > { %v2889_v55 = vadd.f32 %v4573_v33, %v5918_v50  ;;  %v2880_v62 = vpop.f32.mrb[151].mxu1  ;;  %v3062_v1 = vadd.f32 %v2886_v9, %v5600_v16 }
 0x5aa   : > { %v2881_v0 = vadd.f32 %v5918_v50, %v2880_v62  ;;  %v3060_v10 = vadd.f32 %v2878_v31, %v5594_v14 }
 0x5ab   : > { %v3063_v34 = vadd.f32 %v2889_v55, %v5591_v11 }
 0x5ac   : > { %v3061_v13 = vadd.f32 %v2881_v0, %v5597_v15 }
 0x5ad   : > { %v3785_v27 = vpack.c.bf16 %v3063_v34, %v3062_v1 }
 0x5ae   : > { %v3780_v5 = vpack.c.bf16 %v3061_v13, %v3060_v10  ;;  %v4576_v3 = vpop.f32.mrb[152].mxu1 }
 0x5af   : > { %3889 = vst [vmem:[%s5931_s17 + $0x68] sm:$0xff] %v3785_v27   ;;  %v2902_v6 = vadd.f32 %v4576_v3, %v5918_v50  ;;  %v2893_v60 = vpop.f32.mrb[153].mxu1 }
 0x5b0   : > { %3888 = vst [vmem:[%s5931_s17 + $0x60] sm:$0xff] %v3780_v5   ;;  %v2894_v38 = vadd.f32 %v5918_v50, %v2893_v60  ;;  %v4577_v58 = vpop.f32.mrb[154].mxu1  ;;  %v6198_v60 = vld [vmem:[#allocation10_spill] sm:$0xff] }
 0x5b1   : > { %v2905_v16 = vadd.f32 %v4577_v58, %v5918_v50  ;;  %v2896_v11 = vpop.f32.mrb[155].mxu1  ;;  %v3066_v15 = vadd.f32 %v2902_v6, %v5616_v30 }
 0x5b2   : > { %v2897_v14 = vadd.f32 %v5918_v50, %v2896_v11  ;;  %v3064_v46 = vadd.f32 %v2894_v38, %v5610_v28  ;;  %v6199_v38 = vld [vmem:[#allocation7_spill] sm:$0xff] }
 0x5b3   : > { %v3067_v57 = vadd.f32 %v2905_v16, %v5607_v26  ;;  %v6200_v16 = vld [vmem:[#allocation8_spill] sm:$0xff] }
 0x5b4   : > { %v3065_v41 = vadd.f32 %v2897_v14, %v5613_v29  ;;  %v6201_v14 = vld [vmem:[#allocation9_spill] sm:$0xff] }
 0x5b5   : > { %v3795_v44 = vpack.c.bf16 %v3067_v57, %v3066_v15 }
 0x5b6   : > { %v3790_v45 = vpack.c.bf16 %v3065_v41, %v3064_v46  ;;  %v4580_v4 = vpop.f32.mrb[156].mxu1 }
 0x5b7   : > { %3891 = vst [vmem:[%s5931_s17 + $0x78] sm:$0xff] %v3795_v44   ;;  %v2918_v8 = vadd.f32 %v4580_v4, %v5918_v50  ;;  %v2909_v18 = vpop.f32.mrb[157].mxu1 }
 0x5b8   : > { %3890 = vst [vmem:[%s5931_s17 + $0x70] sm:$0xff] %v3790_v45   ;;  %v2910_v24 = vadd.f32 %v5918_v50, %v2909_v18  ;;  %v4581_v19 = vpop.f32.mrb[158].mxu1 }
 0x5b9   : > { %v2921_v30 = vadd.f32 %v4581_v19, %v5918_v50  ;;  %v2912_v26 = vpop.f32.mrb[159].mxu1  ;;  %v3070_v29 = vadd.f32 %v2918_v8, %v5632_v49 }
 0x5ba   : > { %v2913_v28 = vadd.f32 %v5918_v50, %v2912_v26  ;;  %v3068_v22 = vadd.f32 %v2910_v24, %v5626_v47 }
 0x5bb   : > { %v3071_v21 = vadd.f32 %v2921_v30, %v5623_v40  ;;  %v6202_v30 = vld [vmem:[#allocation14_spill] sm:$0xff] }
 0x5bc   : > { %v3069_v36 = vadd.f32 %v2913_v28, %v5629_v48  ;;  %v6203_v28 = vld [vmem:[#allocation11_spill] sm:$0xff] }
 0x5bd   : > { %v3805_v51 = vpack.c.bf16 %v3071_v21, %v3070_v29  ;;  %v6204_v21 = vld [vmem:[#allocation12_spill] sm:$0xff] }
 0x5be   : > { %v3800_v32 = vpack.c.bf16 %v3069_v36, %v3068_v22  ;;  %v4584_v56 = vpop.f32.mrb[160].mxu1  ;;  %v6205_v36 = vld [vmem:[#allocation13_spill] sm:$0xff] }
 0x5bf   : > { %3893 = vst [vmem:[%s5931_s17 + $0x88] sm:$0xff] %v3805_v51   ;;  %v2934_v52 = vadd.f32 %v4584_v56, %v5918_v50  ;;  %v2925_v54 = vpop.f32.mrb[161].mxu1 }
 0x5c0   : > { %3892 = vst [vmem:[%s5931_s17 + $0x80] sm:$0xff] %v3800_v32   ;;  %v2926_v43 = vadd.f32 %v5918_v50, %v2925_v54  ;;  %v4585_v37 = vpop.f32.mrb[162].mxu1 }
 0x5c1   : > { %v2937_v49 = vadd.f32 %v4585_v37, %v5918_v50  ;;  %v2928_v40 = vpop.f32.mrb[163].mxu1  ;;  %v3074_v48 = vadd.f32 %v2934_v52, %v5648_v2 }
 0x5c2   : > { %v2929_v47 = vadd.f32 %v5918_v50, %v2928_v40  ;;  %v3072_v53 = vadd.f32 %v2926_v43, %v5642_v61 }
 0x5c3   : > { %v3075_v42 = vadd.f32 %v2937_v49, %v5639_v59 }
 0x5c4   : > { %v3073_v39 = vadd.f32 %v2929_v47, %v5645_v63 }
 0x5c5   : > { %v3815_v7 = vpack.c.bf16 %v3075_v42, %v3074_v48  ;;  %v6206_v42 = vld [vmem:[#allocation18_spill] sm:$0xff] }
 0x5c6   : > { %v3810_v12 = vpack.c.bf16 %v3073_v39, %v3072_v53  ;;  %v4588_v9 = vpop.f32.mrb[164].mxu1  ;;  %v6207_v39 = vld [vmem:[#allocation15_spill] sm:$0xff] }
 0x5c7   : > { %3895 = vst [vmem:[%s5931_s17 + $0x98] sm:$0xff] %v3815_v7   ;;  %v2950_v35 = vadd.f32 %v4588_v9, %v5918_v50  ;;  %v2941_v31 = vpop.f32.mrb[165].mxu1 }
 0x5c8   : > { %3894 = vst [vmem:[%s5931_s17 + $0x90] sm:$0xff] %v3810_v12   ;;  %v2942_v33 = vadd.f32 %v5918_v50, %v2941_v31  ;;  %v4589_v55 = vpop.f32.mrb[166].mxu1  ;;  %v6208_v12 = vld [vmem:[#allocation16_spill] sm:$0xff] }
 0x5c9   : > { %v2953_v2 = vadd.f32 %v4589_v55, %v5918_v50  ;;  %v2944_v59 = vpop.f32.mrb[167].mxu1  ;;  %v3078_v63 = vadd.f32 %v2950_v35, %v5664_v25  ;;  %v6209_v35 = vld [vmem:[#allocation17_spill] sm:$0xff] }
 0x5ca   : > { %v2945_v61 = vadd.f32 %v5918_v50, %v2944_v59  ;;  %v3076_v0 = vadd.f32 %v2942_v33, %v5658_v20 }
 0x5cb   : > { %v3079_v62 = vadd.f32 %v2953_v2, %v5655_v17 }
 0x5cc   : > { %v3077_v1 = vadd.f32 %v2945_v61, %v5661_v23 }
 0x5cd   : > { %v3825_v34 = vpack.c.bf16 %v3079_v62, %v3078_v63 }
 0x5ce   : > { %v3820_v10 = vpack.c.bf16 %v3077_v1, %v3076_v0  ;;  %v4592_v13 = vpop.f32.mrb[168].mxu1 }
 0x5cf   : > { %3897 = vst [vmem:[%s5931_s17 + $0xa8] sm:$0xff] %v3825_v34   ;;  %v2966_v27 = vadd.f32 %v4592_v13, %v5918_v50  ;;  %v2957_v5 = vpop.f32.mrb[169].mxu1 }
 0x5d0   : > { %3896 = vst [vmem:[%s5931_s17 + $0xa0] sm:$0xff] %v3820_v10   ;;  %v2958_v3 = vadd.f32 %v5918_v50, %v2957_v5  ;;  %v4593_v6 = vpop.f32.mrb[170].mxu1  ;;  %v6210_v10 = vld [vmem:[#allocation22_spill] sm:$0xff] }
 0x5d1   : > { %v2969_v25 = vadd.f32 %v4593_v6, %v5918_v50  ;;  %v2960_v17 = vpop.f32.mrb[171].mxu1  ;;  %v3082_v23 = vadd.f32 %v2966_v27, %v6198_v60  ;;  %v6211_v27 = vld [vmem:[#allocation19_spill] sm:$0xff] }
 0x5d2   : > { %v2961_v20 = vadd.f32 %v5918_v50, %v2960_v17  ;;  %v3080_v11 = vadd.f32 %v2958_v3, %v6200_v16  ;;  %v6212_v3 = vld [vmem:[#allocation20_spill] sm:$0xff] }
 0x5d3   : > { %v3083_v58 = vadd.f32 %v2969_v25, %v6199_v38  ;;  %v6213_v25 = vld [vmem:[#allocation21_spill] sm:$0xff] }
 0x5d4   : > { %v3081_v15 = vadd.f32 %v2961_v20, %v6201_v14 }
 0x5d5   : > { %v3835_v57 = vpack.c.bf16 %v3083_v58, %v3082_v23 }
 0x5d6   : > { %v3830_v46 = vpack.c.bf16 %v3081_v15, %v3080_v11  ;;  %v4596_v41 = vpop.f32.mrb[172].mxu1 }
 0x5d7   : > { %3899 = vst [vmem:[%s5931_s17 + $0xb8] sm:$0xff] %v3835_v57   ;;  %v2982_v44 = vadd.f32 %v4596_v41, %v5918_v50  ;;  %v2973_v45 = vpop.f32.mrb[173].mxu1 }
 0x5d8   : > { %3898 = vst [vmem:[%s5931_s17 + $0xb0] sm:$0xff] %v3830_v46   ;;  %v2974_v4 = vadd.f32 %v5918_v50, %v2973_v45  ;;  %v4597_v8 = vpop.f32.mrb[174].mxu1  ;;  %v6214_v46 = vld [vmem:[#allocation26_spill] sm:$0xff] }
 0x5d9   : > { %v2985_v18 = vadd.f32 %v4597_v8, %v5918_v50  ;;  %v2976_v24 = vpop.f32.mrb[175].mxu1  ;;  %v3086_v26 = vadd.f32 %v2982_v44, %v6202_v30  ;;  %v6215_v44 = vld [vmem:[#allocation23_spill] sm:$0xff] }
 0x5da   : > { %v2977_v19 = vadd.f32 %v5918_v50, %v2976_v24  ;;  %v3084_v22 = vadd.f32 %v2974_v4, %v6204_v21  ;;  %v6216_v4 = vld [vmem:[#allocation24_spill] sm:$0xff] }
 0x5db   : > { %v3087_v29 = vadd.f32 %v2985_v18, %v6203_v28  ;;  %v6217_v18 = vld [vmem:[#allocation25_spill] sm:$0xff] }
 0x5dc   : > { %v3085_v51 = vadd.f32 %v2977_v19, %v6205_v36 }
 0x5dd   : > { %v3845_v32 = vpack.c.bf16 %v3087_v29, %v3086_v26 }
 0x5de   : > { %v3840_v56 = vpack.c.bf16 %v3085_v51, %v3084_v22  ;;  %v4600_v52 = vpop.f32.mrb[176].mxu1 }
 0x5df   : > { %3901 = vst [vmem:[%s5931_s17 + $0xc8] sm:$0xff] %v3845_v32   ;;  %v2998_v54 = vadd.f32 %v4600_v52, %v5918_v50  ;;  %v2989_v43 = vpop.f32.mrb[177].mxu1 }
 0x5e0   : > { %3900 = vst [vmem:[%s5931_s17 + $0xc0] sm:$0xff] %v3840_v56   ;;  %v2990_v37 = vadd.f32 %v5918_v50, %v2989_v43  ;;  %v4601_v49 = vpop.f32.mrb[178].mxu1 }
 0x5e1   : > { %v3001_v40 = vadd.f32 %v4601_v49, %v5918_v50  ;;  %v2992_v47 = vpop.f32.mrb[179].mxu1  ;;  %v3090_v53 = vadd.f32 %v2998_v54, %v6206_v42 }
 0x5e2   : > { %v2993_v48 = vadd.f32 %v5918_v50, %v2992_v47  ;;  %v3088_v9 = vadd.f32 %v2990_v37, %v6208_v12 }
 0x5e3   : > { %v3091_v7 = vadd.f32 %v3001_v40, %v6207_v39 }
 0x5e4   : > { %v3089_v31 = vadd.f32 %v2993_v48, %v6209_v35 }
 0x5e5   : > { %v3855_v33 = vpack.c.bf16 %v3091_v7, %v3090_v53 }
 0x5e6   : > { %v3850_v55 = vpack.c.bf16 %v3089_v31, %v3088_v9  ;;  %v4604_v2 = vpop.f32.mrb[180].mxu1 }
 0x5e7   : > { %3903 = vst [vmem:[%s5931_s17 + $0xd8] sm:$0xff] %v3855_v33   ;;  %v3014_v59 = vadd.f32 %v4604_v2, %v5918_v50  ;;  %v3005_v61 = vpop.f32.mrb[181].mxu1 }
 0x5e8   : > { %3902 = vst [vmem:[%s5931_s17 + $0xd0] sm:$0xff] %v3850_v55   ;;  %v3006_v63 = vadd.f32 %v5918_v50, %v3005_v61  ;;  %v4605_v62 = vpop.f32.mrb[182].mxu1 }
 0x5e9   : > { %v3017_v0 = vadd.f32 %v4605_v62, %v5918_v50  ;;  %v3008_v1 = vpop.f32.mrb[183].mxu1  ;;  %v3094_v13 = vadd.f32 %v3014_v59, %v6210_v10 }
 0x5ea   : > { %v3009_v34 = vadd.f32 %v5918_v50, %v3008_v1  ;;  %v3092_v6 = vadd.f32 %v3006_v63, %v6212_v3 }
 0x5eb   : > { %v3095_v5 = vadd.f32 %v3017_v0, %v6211_v27 }
 0x5ec   : > { %v3093_v17 = vadd.f32 %v3009_v34, %v6213_v25 }
 0x5ed   : > { %v3865_v20 = vpack.c.bf16 %v3095_v5, %v3094_v13 }
 0x5ee   : > { %v3860_v60 = vpack.c.bf16 %v3093_v17, %v3092_v6  ;;  %v4608_v23 = vpop.f32.mrb[184].mxu1 }
 0x5ef   : > { %3905 = vst [vmem:[%s5931_s17 + $0xe8] sm:$0xff] %v3865_v20   ;;  %v3030_v38 = vadd.f32 %v4608_v23, %v5918_v50  ;;  %v3021_v58 = vpop.f32.mrb[185].mxu1 }
 0x5f0   : > { %3904 = vst [vmem:[%s5931_s17 + $0xe0] sm:$0xff] %v3860_v60   ;;  %v3022_v16 = vadd.f32 %v5918_v50, %v3021_v58  ;;  %v4609_v11 = vpop.f32.mrb[186].mxu1 }
 0x5f1   : > { %v3033_v14 = vadd.f32 %v4609_v11, %v5918_v50  ;;  %v3024_v15 = vpop.f32.mrb[187].mxu1  ;;  %v3098_v41 = vadd.f32 %v3030_v38, %v6214_v46 }
 0x5f2   : > { %v3025_v57 = vadd.f32 %v5918_v50, %v3024_v15  ;;  %v3096_v8 = vadd.f32 %v3022_v16, %v6216_v4 }
 0x5f3   : > { %v3099_v45 = vadd.f32 %v3033_v14, %v6215_v44 }
 0x5f4   : > { %v3097_v24 = vadd.f32 %v3025_v57, %v6217_v18 }
 0x5f5   : > { %v3875_v19 = vpack.c.bf16 %v3099_v45, %v3098_v41 }
 0x5f6   : > { %v3870_v50 = vpack.c.bf16 %v3097_v24, %v3096_v8 }
 0x5f7   : > { %3907 = vst [vmem:[%s5931_s17 + $0xf8] sm:$0xff] %v3875_v19  }
 0x5f8   : > { %3906 = vst [vmem:[%s5931_s17 + $0xf0] sm:$0xff] %v3870_v50  }
 0x5f9   : > { %4978 = shalt.err (!%p4975_p3)
}
 0x5fa   : > { %s4979_s24 = scalar_lea.hbm %s6088_s16, 4096  ;;  %s4983_s1 = scalar_lea.hbm %s6150_s13, 8192 }
 0x5fb   : > { %p4980_p4 = scmp.ne.s32.totalorder %s6088_s16, %s4979_s24  ;;  %p4984_p9 = scmp.lt.u32.totalorder %s6088_s16, %s6150_s13 }
 0x5fc   : > { %p4985_p10 = scmp.lt.u32.totalorder %s4983_s1, %s4979_s24  ;;  %p4987_p12 = scmp.lt.u32.totalorder %s4979_s24, %s6088_s16 }
 0x5fd   : > { %p4981_p7 = pnand %p4980_p4, %p5140_p5 }
 0x5fe   : > { %p4986_p11 = por %p4985_p10, %p4984_p9 }
 0x5ff   : > { %p4982_p8 = pneg %p4981_p7 }
 0x600   : > { %p4988_p13 = por %p4987_p12, %p4986_p11 }
 0x602   : > { %p4989_p0 = pnand %p4988_p13, %p4982_p8 }
 0x604   : > { %4992 = shalt.err (!%p4989_p0)
}
 0x605   : > { %s5030_s20 = smov 64   ;;  %s5031_s23 = smov 4  }
 0x606   : > { %4626 = dma.vmem_to_hbm [thread:$0]  (%p5140_p5), %s6090_s30, 4096, %s6088_s16, %s6096_s29, %s5030_s20, %s5030_s20, %s5031_s23  }
 0x607 PF: > { %p4632_p1 = scmp.ge.s32.totalorder %s5027_s28, 2  ;;  %s3449_s27 = sand.u32 1, %s5015_s25  }
 0x608   : > { %s3450_s24 = scalar_lea.sflag [#allocation3], %s3449_s27 }
 0x609   : > { %p4629_p2 = pnand %p4632_p1, %p5144_p6 }
 0x60b   : > { %5010 = dma.done.wait (!%p4629_p2), %s3450_s24, 4096  }
 0x60c   : > { %5012 = vsyncadd (!%p4629_p2), %s3450_s24, 4294963200  ;;  %s6218_s17 = sld [smem:[#allocation5_spill]]  ;;  %s6219_s27 = sld [smem:[#allocation6_spill]] }
 0x60d   : > { %p23_p3 = scmp.ge.s32.totalorder %s5127_s14, 4   ;;  %s6220_s25 = smov %s5019_s26 }
 0x60e   : > { %s6222_s28 = smov %s5127_s14 }
 0x60f   :  { %25 = sbr.rel (!%p23_p3) target bundleno = 5 (0x5), region = 107 }
 0x612   : > { %s6221_s26 = smov %s6218_s17 }
 0x616   :  { %3455 = vsyncpa [#allocation3], 1 }
 0x617   :  { %3457 = vsyncpa [#allocation3 + $0x1], 1 }

</bundles_post_ra>
